<compile_context>
chip_gen: v7x
topology: tpu7x:2x2x1
jax: 0.10.0
libtpu: 0.0.40
codegen_flags: <defaults>
</compile_context>

<pallas_src>
import math

import jax
import jax.numpy as jnp
from jax import lax
from jax.experimental import pallas as pl
from jax.experimental.pallas import tpu as pltpu


# ---------------------------------------------------------------------------
# Pallas kernel: one (batch, depth-block) per grid step.
#   x_ref   : (D+1, H+1, W+1, Cin) bf16 -- whole zero-padded depth of one batch
#   w_ref   : (8*Cin, 8*Cout)      bf16 -- sub-pixel packed weights
#   bias_ref: (1, 8*Cout)          f32
#   o_ref   : (d_blk, H*W, 8*Cout) bf16 -- 8 output sub-pixel phases on the lane dim
# ---------------------------------------------------------------------------
def _deconv_kernel(x_ref, w_ref, bias_ref, o_ref):
    _, hp1, wp1, cin = x_ref.shape
    H, W = hp1 - 1, wp1 - 1
    d_blk = o_ref.shape[0]
    j = pl.program_id(1)

    # Loop invariants hoisted once: the packed weight tile stays MXU/vreg-resident
    # across all d_blk GEMMs of this step; bias is a single f32 vreg row.
    w = w_ref[...]
    b = bias_ref[...]

    def body(t, carry):
        d = j * d_blk + t
        # Fused im2col: the 2x2x2 input window of every output site, gathered as 8
        # shifted (H, W, Cin) slices and lane-concatenated into K = 8*Cin.  No VMEM
        # scratch round trip; Mosaic schedules the (Cin=16-wide) relayout directly
        # into the GEMM operand.
        parts = []
        for dz in (0, 1):                 # depth offset
            for oh in (0, 1):             # height offset
                for ow in (0, 1):         # width offset
                    parts.append(x_ref[d + dz, oh:oh + H, ow:ow + W, :])
        patch = jnp.concatenate(parts, axis=-1).reshape(H * W, 8 * cin)
        acc = jnp.dot(patch, w, preferred_element_type=jnp.float32)
        # Store each depth slice immediately (bf16) instead of building a
        # (d_blk*H*W, 8*Cout) f32 accumulator -> bounded vreg pressure.
        o_ref[t] = (acc + b).astype(o_ref.dtype)
        return carry

    # Plain fori_loop (no unroll): each iteration already carries a full K=8*Cin
    # MXU contraction, and separate iterations bound vreg live ranges.
    lax.fori_loop(0, d_blk, body, 0)


# ---------------------------------------------------------------------------
# Weight packing: PyTorch ConvTranspose3d weight (Cin, Cout, 3, 3, 3) -> dense
# sub-pixel GEMM matrix of shape (8*Cin, 8*Cout).
#   row index    = tap * Cin + ci,     tap   = (od, oh, ow) in the 2x2x2 window
#   column index = phase * Cout + co,  phase = (pd, ph, pw) output sub-pixel
# For stride=2, k=3, padding=1, output_padding=1:
#   even phase (p=0): only input offset 0 contributes, kernel tap k=1
#   odd  phase (p=1): offset 0 -> tap k=2,  offset 1 -> tap k=0
# Taps that do not contribute to a phase are structurally zero (27/64 live; the
# dense K=8*Cin GEMM is deliberately kept -- the kernel is HBM/overhead-bound).
# ---------------------------------------------------------------------------
_TAP = {(0, 0): 1, (0, 1): None, (1, 0): 2, (1, 1): 0}   # (phase, offset) -> k


def _pack_weights(weight, bias):
    Cin, Cout = weight.shape[0], weight.shape[1]
    wm = jnp.zeros((8 * Cin, 8 * Cout), jnp.float32)
    for od in (0, 1):
        for oh in (0, 1):
            for ow in (0, 1):
                t = od * 4 + oh * 2 + ow
                for pd in (0, 1):
                    for ph in (0, 1):
                        for pw in (0, 1):
                            kd, kh, kw = _TAP[(pd, od)], _TAP[(ph, oh)], _TAP[(pw, ow)]
                            if kd is None or kh is None or kw is None:
                                continue
                            p = pd * 4 + ph * 2 + pw
                            wm = wm.at[t * Cin:(t + 1) * Cin,
                                       p * Cout:(p + 1) * Cout].set(weight[:, :, kd, kh, kw])
    bvec = jnp.tile(bias.astype(jnp.float32), 8).reshape(1, 8 * Cout)
    return wm, bvec


def _pick_d_blk(D, target=8):
    """Largest divisor of D that is <= target (bounds the per-step output tile)."""
    for cand in range(min(D, target), 0, -1):
        if D % cand == 0:
            return cand
    return 1


# ---------------------------------------------------------------------------
# Public forward: matches nn.ConvTranspose3d(Cin, Cout, 3, stride=2, padding=1,
# output_padding=1).  x: (N, Cin, D, H, W) f32 -> (N, Cout, 2D, 2H, 2W) f32.
# weight: (Cin, Cout, 3, 3, 3) (PyTorch layout), bias: (Cout,).
# ---------------------------------------------------------------------------
def conv_transpose3d(x, weight, bias, *, d_blk=None):
    N, Cin, D, H, W = x.shape
    Cout = weight.shape[1]
    if d_blk is None:
        d_blk = _pick_d_blk(D)
    n_db = D // d_blk

    # NCDHW -> NDHWC, bf16 MXU inputs, +1 zero pad on the high side of D/H/W (the
    # only positions beyond the original extent this transposed conv ever reads).
    xt = jnp.transpose(x, (0, 2, 3, 4, 1)).astype(jnp.bfloat16)
    xp = jnp.pad(xt, ((0, 0), (0, 1), (0, 1), (0, 1), (0, 0)))

    wm, bvec = _pack_weights(weight, bias)
    wm = wm.astype(jnp.bfloat16)

    out = pl.pallas_call(
        _deconv_kernel,
        out_shape=jax.ShapeDtypeStruct((N, D, H * W, 8 * Cout), jnp.bfloat16),
        grid_spec=pltpu.PrefetchScalarGridSpec(
            num_scalar_prefetch=0,
            grid=(N, n_db),
            in_specs=[
                # Whole padded depth of one batch; index is constant along the
                # depth-block axis so the block is fetched once per batch (no
                # duplicated (d, d+1) halo streams).  ~153 KiB bf16 at demo sizes.
                pl.BlockSpec((None, D + 1, H + 1, W + 1, Cin),
                             lambda n, j: (n, 0, 0, 0, 0)),
                # Constant weight / bias tiles.  (Default double buffering wastes
                # ~32 KiB; single-buffering them is not load-bearing, so skipped.)
                pl.BlockSpec((8 * Cin, 8 * Cout), lambda n, j: (0, 0)),
                pl.BlockSpec((1, 8 * Cout), lambda n, j: (0, 0)),
            ],
            out_specs=pl.BlockSpec((None, d_blk, H * W, 8 * Cout),
                                   lambda n, j: (n, j, 0, 0)),
        ),
        compiler_params=pltpu.CompilerParams(
            # Both axes independent -> >=2 parallel tiles, so both v7x TensorCores
            # get work (v5e/v6e have a single TC; this costs nothing there).
            dimension_semantics=("parallel", "parallel"),
            vmem_limit_bytes=32 * 1024 * 1024,
        ),
    )(xp, wm, bvec)

    # Depth-to-space + NCDHW permute: (N, D, H, W, pd, ph, pw, Cout) ->
    # (N, Cout, 2D, 2H, 2W).  One XLA transpose pass; it now reads bf16 (half the
    # traffic of the previous f32 kernel output) and the f32 cast fuses into it.
    # TODO(synk): writing the interleaved layout directly from the kernel would need
    #             in-kernel sublane/lane interleaves and only pays off if the
    #             surrounding model is channels-last, so it is not done here.
    out = out.reshape(N, D, H, W, 2, 2, 2, Cout)
    out = jnp.transpose(out, (0, 7, 1, 4, 2, 5, 3, 6))
    return out.reshape(N, Cout, 2 * D, 2 * H, 2 * W).astype(jnp.float32)


if __name__ == "__main__":
    key = jax.random.PRNGKey(0)
    k_x, k_w, k_b = jax.random.split(key, 3)

    N, Cin, Cout, D, H, W = 2, 16, 16, 16, 16, 16
    x = jax.random.normal(k_x, (N, Cin, D, H, W), jnp.float32)
    wscale = 1.0 / math.sqrt(Cin * 27)
    weight = wscale * jax.random.normal(k_w, (Cin, Cout, 3, 3, 3), jnp.float32)
    bias = 0.1 * jax.random.normal(k_b, (Cout,), jnp.float32)

    fwd = jax.jit(conv_transpose3d)
    out = jax.block_until_ready(fwd(x, weight, bias))
    assert out.shape == (N, Cout, 2 * D, 2 * H, 2 * W), out.shape
    assert bool(jnp.isfinite(out).all())

    # Reference: XLA transposed conv with the same bf16 inputs / f32 accumulation.
    w_conv = jnp.transpose(jnp.flip(weight, axis=(2, 3, 4)), (1, 0, 2, 3, 4))
    ref = jax.lax.conv_general_dilated(
        x.astype(jnp.bfloat16), w_conv.astype(jnp.bfloat16),
        window_strides=(1, 1, 1), padding=[(1, 2)] * 3, lhs_dilation=(2, 2, 2),
        dimension_numbers=("NCDHW", "OIDHW", "NCDHW"),
        preferred_element_type=jnp.float32,
    ) + bias[None, :, None, None, None]
    err = float(jnp.max(jnp.abs(out - ref)))
    # Kernel stores bf16 (f32 accumulation), so allow ~1 bf16 ulp at |out| ~ 5.
    assert err < 5e-2, f"max abs err vs reference = {err}"
    print("KERNEL_OK")
</pallas_src>

<mosaic_0001>
module attributes {stable_mosaic.version = 11 : i64} {
  func.func @_deconv_kernel(%arg0: i32, %arg1: i32, %arg2: memref<1x17x17x17x16xbf16, #tpu.memory_space<vmem>>, %arg3: memref<128x128xbf16, #tpu.memory_space<vmem>>, %arg4: memref<1x128xf32, #tpu.memory_space<vmem>>, %arg5: memref<1x8x256x128xbf16, #tpu.memory_space<vmem>>) attributes {dimension_semantics = [#tpu.dimension_semantics<parallel>, #tpu.dimension_semantics<parallel>], iteration_bounds = array<i64: 2, 2>, scalar_prefetch = 0 : i64, scratch_operands = 0 : i64, tpu.core_type = #tpu.core_type<tc>, window_params = [{transform_indices = @transform_0, window_bounds = array<i64: 1, 17, 17, 17, 16>}, {pipeline_mode = #tpu.pipeline_mode<synchronous>, transform_indices = @transform_1, window_bounds = array<i64: 128, 128>}, {pipeline_mode = #tpu.pipeline_mode<synchronous>, transform_indices = @transform_2, window_bounds = array<i64: 1, 128>}, {transform_indices = @transform_3, window_bounds = array<i64: 1, 8, 256, 128>}]} {
    %c0 = arith.constant 0 : index
    %c0_0 = arith.constant 0 : index
    %0 = vector.load %arg3[%c0, %c0_0] : memref<128x128xbf16, #tpu.memory_space<vmem>>, vector<128x128xbf16>
    %c0_1 = arith.constant 0 : index
    %c0_2 = arith.constant 0 : index
    %1 = vector.load %arg4[%c0_1, %c0_2] : memref<1x128xf32, #tpu.memory_space<vmem>>, vector<1x128xf32>
    %c0_i32 = arith.constant 0 : i32
    %c8_i32 = arith.constant 8 : i32
    %2 = arith.addi %c0_i32, %c8_i32 : i32
    %c1_i32 = arith.constant 1 : i32
    scf.for %arg6 = %c0_i32 to %2 step %c1_i32  : i32 {
      %c8_i32_4 = arith.constant 8 : i32
      %3 = arith.muli %arg1, %c8_i32_4 : i32
      %4 = arith.addi %3, %arg6 : i32
      %c0_i32_5 = arith.constant 0 : i32
      %5 = arith.addi %4, %c0_i32_5 : i32
      %c0_6 = arith.constant 0 : index
      %6 = arith.index_cast %5 : i32 to index
      %c0_7 = arith.constant 0 : index
      %c0_8 = arith.constant 0 : index
      %c0_9 = arith.constant 0 : index
      %7 = vector.load %arg2[%c0_6, %6, %c0_7, %c0_8, %c0_9] : memref<1x17x17x17x16xbf16, #tpu.memory_space<vmem>>, vector<1x1x16x16x16xbf16>
      %8 = vector.shape_cast %7 : vector<1x1x16x16x16xbf16> to vector<16x16x16xbf16>
      %c0_i32_10 = arith.constant 0 : i32
      %9 = arith.addi %4, %c0_i32_10 : i32
      %c0_11 = arith.constant 0 : index
      %10 = arith.index_cast %9 : i32 to index
      %c0_12 = arith.constant 0 : index
      %c1 = arith.constant 1 : index
      %c0_13 = arith.constant 0 : index
      %11 = vector.load %arg2[%c0_11, %10, %c0_12, %c1, %c0_13] : memref<1x17x17x17x16xbf16, #tpu.memory_space<vmem>>, vector<1x1x16x16x16xbf16>
      %12 = vector.shape_cast %11 : vector<1x1x16x16x16xbf16> to vector<16x16x16xbf16>
      %c0_i32_14 = arith.constant 0 : i32
      %13 = arith.addi %4, %c0_i32_14 : i32
      %c0_15 = arith.constant 0 : index
      %14 = arith.index_cast %13 : i32 to index
      %c1_16 = arith.constant 1 : index
      %c0_17 = arith.constant 0 : index
      %c0_18 = arith.constant 0 : index
      %15 = vector.load %arg2[%c0_15, %14, %c1_16, %c0_17, %c0_18] : memref<1x17x17x17x16xbf16, #tpu.memory_space<vmem>>, vector<1x1x16x16x16xbf16>
      %16 = vector.shape_cast %15 : vector<1x1x16x16x16xbf16> to vector<16x16x16xbf16>
      %c0_i32_19 = arith.constant 0 : i32
      %17 = arith.addi %4, %c0_i32_19 : i32
      %c0_20 = arith.constant 0 : index
      %18 = arith.index_cast %17 : i32 to index
      %c1_21 = arith.constant 1 : index
      %c1_22 = arith.constant 1 : index
      %c0_23 = arith.constant 0 : index
      %19 = vector.load %arg2[%c0_20, %18, %c1_21, %c1_22, %c0_23] : memref<1x17x17x17x16xbf16, #tpu.memory_space<vmem>>, vector<1x1x16x16x16xbf16>
      %20 = vector.shape_cast %19 : vector<1x1x16x16x16xbf16> to vector<16x16x16xbf16>
      %c1_i32_24 = arith.constant 1 : i32
      %21 = arith.addi %4, %c1_i32_24 : i32
      %c0_25 = arith.constant 0 : index
      %22 = arith.index_cast %21 : i32 to index
      %c0_26 = arith.constant 0 : index
      %c0_27 = arith.constant 0 : index
      %c0_28 = arith.constant 0 : index
      %23 = vector.load %arg2[%c0_25, %22, %c0_26, %c0_27, %c0_28] : memref<1x17x17x17x16xbf16, #tpu.memory_space<vmem>>, vector<1x1x16x16x16xbf16>
      %24 = vector.shape_cast %23 : vector<1x1x16x16x16xbf16> to vector<16x16x16xbf16>
      %c1_i32_29 = arith.constant 1 : i32
      %25 = arith.addi %4, %c1_i32_29 : i32
      %c0_30 = arith.constant 0 : index
      %26 = arith.index_cast %25 : i32 to index
      %c0_31 = arith.constant 0 : index
      %c1_32 = arith.constant 1 : index
      %c0_33 = arith.constant 0 : index
      %27 = vector.load %arg2[%c0_30, %26, %c0_31, %c1_32, %c0_33] : memref<1x17x17x17x16xbf16, #tpu.memory_space<vmem>>, vector<1x1x16x16x16xbf16>
      %28 = vector.shape_cast %27 : vector<1x1x16x16x16xbf16> to vector<16x16x16xbf16>
      %c1_i32_34 = arith.constant 1 : i32
      %29 = arith.addi %4, %c1_i32_34 : i32
      %c0_35 = arith.constant 0 : index
      %30 = arith.index_cast %29 : i32 to index
      %c1_36 = arith.constant 1 : index
      %c0_37 = arith.constant 0 : index
      %c0_38 = arith.constant 0 : index
      %31 = vector.load %arg2[%c0_35, %30, %c1_36, %c0_37, %c0_38] : memref<1x17x17x17x16xbf16, #tpu.memory_space<vmem>>, vector<1x1x16x16x16xbf16>
      %32 = vector.shape_cast %31 : vector<1x1x16x16x16xbf16> to vector<16x16x16xbf16>
      %c1_i32_39 = arith.constant 1 : i32
      %33 = arith.addi %4, %c1_i32_39 : i32
      %c0_40 = arith.constant 0 : index
      %34 = arith.index_cast %33 : i32 to index
      %c1_41 = arith.constant 1 : index
      %c1_42 = arith.constant 1 : index
      %c0_43 = arith.constant 0 : index
      %35 = vector.load %arg2[%c0_40, %34, %c1_41, %c1_42, %c0_43] : memref<1x17x17x17x16xbf16, #tpu.memory_space<vmem>>, vector<1x1x16x16x16xbf16>
      %36 = vector.shape_cast %35 : vector<1x1x16x16x16xbf16> to vector<16x16x16xbf16>
      %37 = tpu.concatenate %8, %12, %16, %20, %24, %28, %32, %36 in 2 : vector<16x16x16xbf16>, vector<16x16x16xbf16>, vector<16x16x16xbf16>, vector<16x16x16xbf16>, vector<16x16x16xbf16>, vector<16x16x16xbf16>, vector<16x16x16xbf16>, vector<16x16x16xbf16> -> vector<16x16x128xbf16>
      %38 = vector.shape_cast %37 : vector<16x16x128xbf16> to vector<256x128xbf16>
      %cst = arith.constant dense<0.000000e+00> : vector<256x128xf32>
      %39 = tpu.matmul %38, %0, %cst {dimension_numbers = #tpu.dot_dimension_numbers<[1], [0], [0], [1], [0, 0, 1, 1], [], []>} : vector<256x128xbf16>, vector<128x128xbf16>, vector<256x128xf32> -> vector<256x128xf32>
      %40 = vector.broadcast %1 : vector<1x128xf32> to vector<256x128xf32>
      %41 = arith.addf %39, %40 : vector<256x128xf32>
      %42 = arith.truncf %41 : vector<256x128xf32> to vector<256x128xbf16>
      %c0_44 = arith.constant 0 : index
      %43 = arith.index_cast %arg6 : i32 to index
      %c0_45 = arith.constant 0 : index
      %c0_46 = arith.constant 0 : index
      %44 = vector.load %arg5[%c0_44, %43, %c0_45, %c0_46] : memref<1x8x256x128xbf16, #tpu.memory_space<vmem>>, vector<1x1x256x128xbf16>
      %45 = vector.shape_cast %44 : vector<1x1x256x128xbf16> to vector<256x128xbf16>
      %46 = vector.shape_cast %42 : vector<256x128xbf16> to vector<1x1x256x128xbf16>
      tpu.vector_store %arg5[%c0_44, %43, %c0_45, %c0_46], %46 {strides = array<i32>} : memref<1x8x256x128xbf16, #tpu.memory_space<vmem>>, vector<1x1x256x128xbf16>,
    }
    %c8_i32_3 = arith.constant 8 : i32
    return
  }
  func.func @transform_0(%arg0: i32, %arg1: i32) -> (i32, i32, i32, i32, i32) {
    %c0_i32 = arith.constant 0 : i32
    %c0_i32_0 = arith.constant 0 : i32
    %c0_i32_1 = arith.constant 0 : i32
    %c0_i32_2 = arith.constant 0 : i32
    %c0_i32_3 = arith.constant 0 : i32
    return %arg0, %c0_i32, %c0_i32_0, %c0_i32_1, %c0_i32_2 : i32, i32, i32, i32, i32
  }
  func.func @transform_1(%arg0: i32, %arg1: i32) -> (i32, i32) {
    %c0_i32 = arith.constant 0 : i32
    %c0_i32_0 = arith.constant 0 : i32
    %c0_i32_1 = arith.constant 0 : i32
    return %c0_i32, %c0_i32_0 : i32, i32
  }
  func.func @transform_2(%arg0: i32, %arg1: i32) -> (i32, i32) {
    %c0_i32 = arith.constant 0 : i32
    %c0_i32_0 = arith.constant 0 : i32
    %c0_i32_1 = arith.constant 0 : i32
    return %c0_i32, %c0_i32_0 : i32, i32
  }
  func.func @transform_3(%arg0: i32, %arg1: i32) -> (i32, i32, i32, i32) {
    %c0_i32 = arith.constant 0 : i32
    %c0_i32_0 = arith.constant 0 : i32
    %c0_i32_1 = arith.constant 0 : i32
    return %arg0, %arg1, %c0_i32, %c0_i32_0 : i32, i32, i32, i32
  }
}

</mosaic_0001>

<bundles_post_ra>
// kernel: tile.8
= control target key start
LH: loop header
LB: loop body
LE: loop exit
PB: predicated region body
PF: predicated region fallthrough
CT: control target
= control target key end

     0   :  { %2 = vsyncpa [#allocation1], 0  ;;  %s44_s6 = smov [#allocation0]   ;;  %s70_s0 = inlined_call_operand.hbm [shape: f32[16], index: 0, kind: input, shape index: {}]   ;;  %s71_s1 = inlined_call_operand.vmem [shape: f32[8,16], index: 1, kind: output, shape index: {}]  }
   0x1   :  { %s9_s7 = sshll.u32 %s44_s6, 4  ;;  %s20_s10 = scalar_lea.hbm %s70_s0, 16  ;;  %s10_s7 = int_to_ptr.vmem [resolvable:$true] %s9_s7 }
   0x2   :  { %p21_p0 = scmp.ne.s32.totalorder %s70_s0, %s20_s10  ;;  %p24_p1 = scmp.lt.u32.totalorder %s20_s10, %s70_s0 }
   0x4   :  { %p26_p2 = pnand %p24_p1, %p21_p0 }
   0x6   :  { %29 = shalt.err (!%p26_p2)
}
   0x7   :  { %s30_s15 = scalar_lea.vmem %s10_s7, 16  ;;  %s34_s16 = scalar_lea.vmem %s10_s7, 32 }
   0x8   :  { %p31_p3 = scmp.ne.s32.totalorder %s10_s7, %s30_s15  ;;  %p35_p4 = scmp.lt.s32.totalorder %s10_s7, %s10_s7 }
   0x9   :  { %p36_p5 = scmp.lt.s32.totalorder %s34_s16, %s30_s15 }
   0xb   :  { %p37_p6 = por %p36_p5, %p35_p4 }
   0xd   :  { %p38_p7 = pnand %p37_p6, %p31_p3 }
   0xf   :  { %41 = shalt.err (!%p38_p7)
}
  0x10   :  { %12 = dma.hbm_to_vmem [thread:$0]  %s70_s0, 16, %s10_s7, [#allocation1]  }
  0x11   :  { %42 = dma.done.wait [#allocation1], 16  }
  0x12   :  { %43 = vsyncadd [#allocation1], 4294967280  ;;  %v16_v0 = vld [vmem:[#allocation0] ss:$0 sm:$0xff] }
  0x13   :  { %17 = vst [vmem:[%s71_s1] sm:$0xff] %v16_v0 }
  0x14   :  { %18 = vsyncpa [#allocation1], 1 }

// kernel: tile.9
= control target key start
LH: loop header
LB: loop body
LE: loop exit
PB: predicated region body
PF: predicated region fallthrough
CT: control target
= control target key end

     0   :  { %s67_s10 = smov 112   ;;  %s68_s11 = smov 80   ;;  %vm3_vm0 = vcmask 130048   ;;  %vm9_vm1 = vcmask 1048448   ;;  %vm15_vm2 = vcmask 917248   ;;  %vm21_vm3 = vcmask 786048   ;;  %s111_s0 = inlined_call_operand.vmem [shape: f32[8,16], index: 0, kind: input, shape index: {}]   ;;  %s112_s1 = inlined_call_operand.vmem [shape: f32[1,128], index: 1, kind: output, shape index: {}]  }
   0x1   :  { %v53_v0 = vld [vmem:[%s111_s0 + $0x7] sm:$0x1]   ;;  %v55_v1 = vld [vmem:[%s111_s0 + $0x5] sm:$0x1]   ;;  %v54_v2 = vld [vmem:[%s111_s0 + $0x6] sm:$0x1]  }
   0x2   :  { %7 = vrot.lane.b32.xlu0 %v53_v0, %s67_s10  ;;  %19 = vrot.lane.b32.xlu1 %v55_v1, %s68_s11  ;;  %v56_v3 = vld [vmem:[%s111_s0 + $0x4] sm:$0x1]   ;;  %v2_v4 = vld [vmem:[%s111_s0] sm:$0x1]   ;;  %s69_s18 = smov 96   ;;  %s70_s19 = smov 64  }
   0x3   :  { %4 = vst.msk [vmem:[#allocation0] sm:$0x1] %vm3_vm0, %v2_v4   ;;  %v57_v5 = vld [vmem:[%s111_s0 + $0x3] sm:$0x1]   ;;  %v58_v6 = vld [vmem:[%s111_s0 + $0x2] sm:$0x1]  }
   0x4   :  { %s71_s24 = smov 48   ;;  %s72_s25 = smov 32   ;;  %v59_v7 = vld [vmem:[%s111_s0 + $0x1] sm:$0x1]   ;;  %vm27_vm4 = vcmask 654848   ;;  %vm33_vm5 = vcmask 523648  }
   0x5   :  { %s73_s0 = smov 16   ;;  %vm39_vm6 = vcmask 392448   ;;  %vm45_vm7 = vcmask 261248  }
   0x6   :  { %13 = vrot.lane.b32.xlu0 %v54_v2, %s69_s18  ;;  %25 = vrot.lane.b32.xlu1 %v56_v3, %s70_s19 }
   0xa   :  { %31 = vrot.lane.b32.xlu0 %v57_v5, %s71_s24  ;;  %37 = vrot.lane.b32.xlu1 %v58_v6, %s72_s25 }
   0xe   :  { %43 = vrot.lane.b32.xlu0 %v59_v7, %s73_s0 }
  0x74   :  { %v8_v8 = vpop.permute.xlu0 %7   ;;  %v20_v9 = vpop.permute.xlu1 %19  }
  0x75   :  { %10 = vst.msk [vmem:[#allocation0] sm:$0x1] %vm9_vm1, %v8_v8  }
  0x78   :  { %v14_v10 = vpop.permute.xlu0 %13   ;;  %v26_v11 = vpop.permute.xlu1 %25  }
  0x79   :  { %16 = vst.msk [vmem:[#allocation0] sm:$0x1] %vm15_vm2, %v14_v10  }
  0x7a   :  { %22 = vst.msk [vmem:[#allocation0] sm:$0x1] %vm21_vm3, %v20_v9  }
  0x7b   :  { %28 = vst.msk [vmem:[#allocation0] sm:$0x1] %vm27_vm4, %v26_v11  }
  0x7c   :  { %v32_v12 = vpop.permute.xlu0 %31   ;;  %v38_v13 = vpop.permute.xlu1 %37  }
  0x7d   :  { %34 = vst.msk [vmem:[#allocation0] sm:$0x1] %vm33_vm5, %v32_v12  }
  0x7e   :  { %40 = vst.msk [vmem:[#allocation0] sm:$0x1] %vm39_vm6, %v38_v13  }
  0x80   :  { %v44_v14 = vpop.permute.xlu0 %43  }
  0x81   :  { %46 = vst.msk [vmem:[#allocation0] sm:$0x1] %vm45_vm7, %v44_v14  }
  0x88   :  { %v50_v15 = vld [vmem:[#allocation0] sm:$0x1] }
  0x89   :  { %52 = vst [vmem:[%s112_s1] sm:$0x1] %v50_v15 }

// kernel: conv_transpose3d.1
= control target key start
LH: loop header
LB: loop body
LE: loop exit
PB: predicated region body
PF: predicated region fallthrough
CT: control target
= control target key end

     0   :  { %8 = vsyncpa [#allocation3], 0  ;;  %s4521_s0 = inlined_call_operand.vmem [shape: bf16[2,17,17,17,16], index: 0, kind: input, shape index: {}]   ;;  %s4522_s1 = inlined_call_operand.vmem [shape: bf16[128,128], index: 1, kind: input, shape index: {}]   ;;  %s4523_s2 = inlined_call_operand.vmem [shape: f32[1,128], index: 2, kind: input, shape index: {}]   ;;  %s4524_s3 = inlined_call_operand.hbm [shape: bf16[2,16,256,128], index: 3, kind: output, shape index: {}]  }
   0x1   :  { %10 = vsyncpa [#allocation3 + $0x1], 0  ;;  %s3583_s12 = smov 0   ;;  %s3585_s13 = smov 0  }
   0x2   :  { %s3587_s14 = smov 0   ;;  %s3589_s15 = smov 0  }
   0x3   :  { %s3591_s16 = smov 0   ;;  %s3593_s17 = smov 0  }
   0x4   :  { %s3595_s18 = smov 0   ;;  %s3597_s19 = smov 0  }
   0x5 LB: > { %s2666_s20 = sadd.s32 4294967295, %s3547_s19   ;;  %s2667_s21 = sadd.s32 4294967294, %s3547_s19   ;;  %s3547_s19 = sphi %s3597_s19, %s16_s19   ;;  %s3543_s18 = sphi %s3595_s18, %s4541_s18   ;;  %s3539_s17 = sphi %s3593_s17, %s4540_s17   ;;  %s3535_s16 = sphi %s3591_s16, %s4539_s16   ;;  %s3531_s15 = sphi %s3589_s15, %s4538_s15   ;;  %s3527_s14 = sphi %s3587_s14, %s4537_s14   ;;  %s3523_s13 = sphi %s3585_s13, %s4536_s13   ;;  %s3519_s12 = sphi %s3583_s12, %s4535_s12  }
   0x6   : > { %s25_s22 = sadd.s32 1, %s3539_s17  ;;  %s28_s23 = sadd.s32 1, %s3543_s18 }
   0x7   : > { %p26_p0 = scmp.ge.s32.totalorder %s25_s22, 2  ;;  %p115_p1 = scmp.ne.s32.totalorder %s3527_s14, %s3523_s13 }
   0x8   : > { %p116_p2 = scmp.eq.s32.totalorder %s2666_s20, 3  ;;  %p121_p5 = scmp.ne.s32.totalorder %s3523_s13, %s3519_s12 }
   0x9   : > { %s4543_s22 = smov (%p26_p0, %s25_s22), 0  ;;  %s4545_s23 = smov (!%p26_p0, %s28_s23), %s3543_s18 }
   0xa   : > { %s101_s24 = ssub.s32 %s3539_s17, %s4543_s22  ;;  %p3634_p3 = por %p116_p2, %p115_p1 }
   0xb   : > { %p30_p4 = scmp.ge.s32.totalorder %s4545_s23, 2  ;;  %p122_p6 = scmp.eq.s32.totalorder %s2667_s21, 3 }
   0xc   : > { %p2670_p7 = scmp.ge.s32.totalorder %s3547_s19, 1  ;;  %p154_p9 = scmp.lt.s32.totalorder %s3547_s19, 5 }
   0xd   : > { %s4547_s23 = smov (%p30_p4, %s4545_s23), 0  ;;  %p3643_p8 = por %p122_p6, %p121_p5 }
   0xe   : > { %s100_s27 = ssub.s32 %s3543_s18, %s4547_s23  ;;  %s105_s28 = sadd.s32 1, %s3527_s14 }
   0xf   : > { %s102_s29 = sor.u32 %s101_s24, %s100_s27  ;;  %p155_p10 = pnand %p2670_p7, %p154_p9 }
  0x10   : > { %p103_p11 = scmp.eq.s32.totalorder %s102_s29, 0 }
  0x11   : > { %158 = sbr.rel (%p155_p10) target bundleno = 610 (0x262), region = 32 }
  0x12   : > { %s3652_s30 = scalar_select %p103_p11, %s3527_s14, %s105_s28  }
  0x18   : > { %s175_s4 = sand.u32 1, %s3523_s13   ;;  %p178_p12 = scmp.lt.s32.totalorder %s3535_s16, 1  ;;  %v3659_v0 = vld [vmem:[%s4522_s1] sm:$0xf]  ;;  %v3664_v1 = vld [vmem:[%s4522_s1 + $0x4] sm:$0xf] }
  0x19   : > { %4527 = vst [vmem:[#allocation5_spill] sm:$0xff] %v3659_v0  ;;  %4528 = vst [vmem:[#allocation6_spill] sm:$0xff] %v3664_v1  ;;  %s3668_s9 = sshll.u32 %s175_s4, 10  ;;  %v3673_v2 = vld [vmem:[%s4522_s1 + $0x8] sm:$0xf]  ;;  %s3752_s20 = smov 0  }
  0x1a   : > { %4529 = vst [vmem:[#allocation7_spill] sm:$0xff] %v3673_v2  ;;  %v3678_v3 = vld [vmem:[%s4522_s1 + $0xc] sm:$0xf]  ;;  %v3683_v4 = vld [vmem:[%s4522_s1 + $0x10] sm:$0xf]  ;;  %s179_s5 = scalar_select %p178_p12, %s3535_s16, 1 }
  0x1b   : > { %4530 = vst [vmem:[#allocation8_spill] sm:$0xff] %v3678_v3  ;;  %v3688_v5 = vld [vmem:[%s4522_s1 + $0x14] sm:$0xf]  ;;  %v3694_v6 = vld [vmem:[%s4522_s1 + $0x18] sm:$0xf]  ;;  %s177_s11 = scalar_lea.vmem [#allocation2], %s3668_s9 }
  0x1c   : > { %v3699_v7 = vld [vmem:[%s4522_s1 + $0x1c] sm:$0xf]  ;;  %v3704_v8 = vld [vmem:[%s4522_s1 + $0x20] sm:$0xf]  ;;  %v3709_v9 = vld [vmem:[%s4522_s1 + $0x24] sm:$0xf] }
  0x1d   : > { %v3714_v10 = vld [vmem:[%s4522_s1 + $0x28] sm:$0xf]  ;;  %s3220_s29 = smul.u32 3468, %s179_s5  ;;  %v3719_v11 = vld [vmem:[%s4522_s1 + $0x2c] sm:$0xf] }
  0x1e   : > { %v3724_v12 = vld [vmem:[%s4522_s1 + $0x30] sm:$0xf]  ;;  %v3729_v13 = vld [vmem:[%s4522_s1 + $0x34] sm:$0xf]  ;;  %v3734_v14 = vld [vmem:[%s4522_s1 + $0x38] sm:$0xf] }
  0x1f   : > { %v3739_v15 = vld [vmem:[%s4522_s1 + $0x3c] sm:$0xf]  ;;  %s3744_s7 = scalar_lea.vmem %s4521_s0, %s3220_s29  ;;  %v3749_v16 = vld [vmem:[%s4523_s2] ss:$0 sm:$0xff] }
  0x20 LB: >> { %s2673_s21 = sshll.u32 %s3531_s15, 3  ;;  %vm543_vm0 = vsmask.f32 7424  ;;  %s3553_s27 = smov 32   ;;  %v4531_v1 = vld [vmem:[#allocation6_spill] sm:$0xff]  ;;  %v4532_v0 = vld [vmem:[#allocation5_spill] sm:$0xff]  ;;  %s3551_s20 = sphi %s3752_s20, %s207_s20  }
  0x21   : >> { %s209_s24 = sadd.s32 %s3551_s20, %s2673_s21  ;;  %s3554_s28 = smov 16   ;;  %v2953_v56 = vcombine.low %v4532_v0, %v4531_v1  ;;  %v4534_v2 = vld [vmem:[#allocation7_spill] sm:$0xff]  ;;  %vm1920_vm1 = vcmask 130048   ;;  %vm1953_vm2 = vcmask 261120   ;;  %vm1986_vm3 = vcmask 392192  }
  0x22   : >> { %s3002_s29 = smul.u32 204, %s209_s24  ;;  %v4533_v3 = vld [vmem:[#allocation8_spill] sm:$0xff]  ;;  %s3555_s6 = smov 48   ;;  %vm2019_vm4 = vcmask 523264   ;;  %vm2052_vm5 = vcmask 654336   ;;  %vm2085_vm6 = vcmask 785408  }
  0x23   : >> { %3156 = vmatprep.subr.bf16.mxu0 %v2953_v56  ;;  %3204 = vmatprep.subr.bf16.mxu1 %v2953_v56  ;;  %s3556_s8 = smov 64   ;;  %s3557_s10 = smov 80   ;;  %vm2118_vm7 = vcmask 916480  }
  0x24   : >> { %s3760_s5 = scalar_lea.vmem %s3744_s7, %s3002_s29  ;;  %3157 = vmatpush3.bf16.msra.mxu0 %v2953_v56  ;;  %3212 = vmatpush3.bf16.msra.mxu1 %v2953_v56  ;;  %v2956_v56 = vcombine.low %v3694_v6, %v3699_v7  ;;  %s3558_s21 = smov 96  }
  0x25   : >> { %v3309_v17 = vld [vmem:[%s3760_s5 + $0x6c] sm:$0xff]   ;;  %v3768_v20 = vld [vmem:[%s3760_s5 + $0x78] sm:$0xff]   ;;  %v3314_v26 = vld [vmem:[%s3760_s5 + $0x14] ss:$0 sps:$4 sm:$0x11]   ;;  %s3559_s24 = smov 112  }
  0x26   : >> { %v3764_v18 = vld [vmem:[%s3760_s5 + $0xc] sm:$0xff]   ;;  %864 = vrot.lane.b32.xlu1 %v3309_v17, %s3553_s27  ;;  %v1027_v19 = vshll.u32 %v3309_v17, 16  ;;  %v3774_v22 = vld [vmem:[%s3760_s5 + $0x18] sm:$0xff]   ;;  %v1039_v23 = vshll.u32 %v3768_v20, 16  ;;  %v564_v29 = vshll.u32 %v3314_v26, 16  ;;  %v3315_v30 = vld [vmem:[%s3760_s5] sm:$0xff]  }
  0x27   : >> { %848 = vrot.lane.b32.xlu0 %v3764_v18, %s3553_s27  ;;  %v931_v21 = vshll.u32 %v3764_v18, 16  ;;  %v3313_v24 = vld [vmem:[%s3760_s5 + $0xc] sm:$0xff]   ;;  %v943_v25 = vshll.u32 %v3774_v22, 16  ;;  %v3316_v32 = vld [vmem:[%s3760_s5 + $0x8] ss:$0 sps:$4 sm:$0x11]  }
  0x28   : >> { %v557_v27 = vshrl.u32 %v3313_v24, 16  ;;  %v559_v28 = vshll.u32 %v3313_v24, 16  ;;  %v566_v33 = vrot.slane %v564_v29, 1  ;;  %v545_v34 = vshrl.u32 %v3315_v30, 16  ;;  %v3317_v36 = vld [vmem:[%s3760_s5 + $0x6c] sm:$0xff]   ;;  %v3319_v43 = vld [vmem:[%s3760_s5 + $0x60] sm:$0xff]  }
  0x29   : >> { %v547_v35 = vshll.u32 %v3315_v30, 16  ;;  %v552_v38 = vshll.u32 %v3316_v32, 16  ;;  %v3318_v39 = vld [vmem:[%s3760_s5 + $0x74] ss:$0 sps:$4 sm:$0x11]   ;;  %v653_v41 = vshrl.u32 %v3317_v36, 16 }
  0x2a   : >> { %866 = vrot.lane.b32.xlu1 %v3768_v20, %s3553_s27  ;;  %v561_v31 = vrot.slane %v559_v28, 1  ;;  %v655_v42 = vshll.u32 %v3317_v36, 16  ;;  %v660_v46 = vshll.u32 %v3318_v39, 16  ;;  %v3320_v49 = vld [vmem:[%s3760_s5 + $0x68] ss:$0 sps:$4 sm:$0x11]  }
  0x2b   : >> { %850 = vrot.lane.b32.xlu0 %v3774_v22, %s3553_s27  ;;  %v549_v40 = vrot.slane %v547_v35, 1  ;;  %v554_v45 = vrot.slane %v552_v38, 1  ;;  %v641_v50 = vshrl.u32 %v3319_v43, 16  ;;  %v643_v51 = vshll.u32 %v3319_v43, 16  ;;  %s3035_s29 = sshll.u32 %s3551_s20, 7  ;;  %s207_s20 = sadd.s32 1, %s3551_s20  }
  0x2c   : >> { %v562_v37 = vor.u32 %v561_v31, %v557_v27  ;;  %v657_v48 = vrot.slane %v655_v42, 1  ;;  %v662_v52 = vrot.slane %v660_v46, 1  ;;  %v3321_v53 = vld [vmem:[%s3760_s5 + $0x74] ss:$0 sps:$4 sm:$0x11]   ;;  %v1025_v54 = vshrl.u32 %v3309_v17, 16 }
  0x2d   : >> { %v550_v47 = vor.u32 %v549_v40, %v545_v34  ;;  %v1029_v55 = vrot.slane %v1027_v19, 1  ;;  %v645_v59 = vrot.slane %v643_v51, 1  ;;  %v648_v60 = vshll.u32 %v3320_v49, 16  ;;  %v3322_v63 = vld [vmem:[%s3760_s5 + $0x14] ss:$0 sps:$4 sm:$0x11]  }
  0x2e   : >> { %v567_v44 = vsel %vm543_vm0, %v562_v37, %v566_v33  ;;  %v658_v58 = vor.u32 %v657_v48, %v653_v41  ;;  %v1032_v62 = vshll.u32 %v3321_v53, 16  ;;  %v929_v24 = vshrl.u32 %v3764_v18, 16  ;;  %v3323_v28 = vld [vmem:[%s3760_s5 + $0x80] ss:$0 sps:$4 sm:$0x11]   ;;  %v3325_v18 = vld [vmem:[%s3760_s5 + $0x12c] sm:$0xff]  }
  0x2f   : >> { %738 = vrot.lane.b32.xlu1 %v567_v44, %s3554_s28  ;;  %v555_v57 = vsel %vm543_vm0, %v550_v47, %v554_v45  ;;  %v1030_v61 = vor.u32 %v1029_v55, %v1025_v54  ;;  %v933_v26 = vrot.slane %v931_v21, 1  ;;  %v646_v19 = vor.u32 %v645_v59, %v641_v50  ;;  %v3324_v35 = vld [vmem:[%s3760_s5 + $0x20] ss:$0 sps:$4 sm:$0x11]   ;;  %v3326_v40 = vld [vmem:[%s3760_s5 + $0xcc] sm:$0xff]   ;;  %v3328_v48 = vld [vmem:[%s3760_s5 + $0xd8] sm:$0xff]  }
  0x30   : >> { %736 = vrot.lane.b32.xlu0 %v555_v57, %s3554_s28  ;;  %v663_v17 = vsel %vm543_vm0, %v658_v58, %v662_v52  ;;  %v650_v27 = vrot.slane %v648_v60, 1  ;;  %v1037_v29 = vshrl.u32 %v3768_v20, 16  ;;  %v1034_v30 = vrot.slane %v1032_v62, 1  ;;  %v3329_v49 = vld [vmem:[%s3760_s5 + $0x134] ss:$0 sps:$4 sm:$0x11]  }
  0x31   : >> { %v934_v31 = vor.u32 %v933_v26, %v929_v24  ;;  %v936_v32 = vshll.u32 %v3322_v63, 16  ;;  %v1041_v33 = vrot.slane %v1039_v23, 1  ;;  %v1044_v34 = vshll.u32 %v3323_v28, 16  ;;  %v3330_v55 = vld [vmem:[%s3760_s5 + $0xd4] ss:$0 sps:$4 sm:$0x11]  }
  0x32   : >> { %v651_v21 = vsel %vm543_vm0, %v646_v19, %v650_v27  ;;  %v941_v36 = vshrl.u32 %v3774_v22, 16  ;;  %v945_v20 = vrot.slane %v943_v25, 1  ;;  %v1035_v37 = vsel %vm543_vm0, %v1030_v61, %v1034_v30  ;;  %v3327_v25 = vld [vmem:[%s3760_s5 + $0x138] sm:$0xff]   ;;  %v3331_v58 = vld [vmem:[%s3760_s5 + $0x140] ss:$0 sps:$4 sm:$0x11]  }
  0x33   : >> { %754 = vrot.lane.b32.xlu1 %v663_v17, %s3554_s28  ;;  %v938_v38 = vrot.slane %v936_v32, 1  ;;  %v1042_v39 = vor.u32 %v1041_v33, %v1037_v29  ;;  %v1046_v23 = vrot.slane %v1044_v34, 1  ;;  %v948_v42 = vshll.u32 %v3324_v35, 16  ;;  %v3332_v24 = vld [vmem:[%s3760_s5 + $0xe0] ss:$0 sps:$4 sm:$0x11]  }
  0x34   : >> { %752 = vrot.lane.b32.xlu0 %v651_v21, %s3554_s28  ;;  %v946_v41 = vor.u32 %v945_v20, %v941_v36  ;;  %v2954_v43 = vcombine.low %v4534_v2, %v4533_v3  ;;  %v2955_v44 = vcombine.low %v3683_v4, %v3688_v5  ;;  %v1411_v47 = vshll.u32 %v3325_v18, 16  ;;  %v3840_v34 = vld [vmem:[%s3760_s5 + $0xd8] sm:$0xff]   ;;  %p204_p13 = scmp.ge.s32.totalorder %s207_s20, 8  }
  0x35   : >> { %v939_v22 = vsel %vm543_vm0, %v934_v31, %v938_v38  ;;  %v1047_v45 = vsel %vm543_vm0, %v1042_v39, %v1046_v23  ;;  %v950_v46 = vrot.slane %v948_v42, 1  ;;  %v1315_v51 = vshll.u32 %v3326_v40, 16  ;;  %v3337_v38 = vld [vmem:[%s3760_s5 + $0x140] ss:$0 sps:$4 sm:$0x11]   ;;  %v3853_v42 = vld [vmem:[%s3760_s5 + $0xe4] sm:$0xff]  }
  0x36   : >> { %3158 = vmatprep.subr.bf16.mxu0 %v2954_v43  ;;  %3205 = vmatprep.subr.bf16.mxu1 %v2954_v43  ;;  %v1423_v52 = vshll.u32 %v3327_v25, 16  ;;  %v1409_v53 = vshrl.u32 %v3325_v18, 16  ;;  %v1416_v54 = vshll.u32 %v3329_v49, 16  ;;  %v1413_v57 = vrot.slane %v1411_v47, 1  ;;  %s4469_s7 = scalar_lea.sflag (%p204_p13), [#allocation3], %s175_s4 }
  0x37   : >> { %1136 = vrot.lane.b32.xlu1 %v1035_v37, %s3555_s6  ;;  %3159 = vmatpush3.bf16.msra.mxu0 %v2954_v43  ;;  %v951_v50 = vsel %vm543_vm0, %v946_v41, %v950_v46  ;;  %v1327_v59 = vshll.u32 %v3328_v48, 16  ;;  %v1313_v60 = vshrl.u32 %v3326_v40, 16  ;;  %v1317_v61 = vrot.slane %v1315_v51, 1  ;;  %v3846_v37 = vld [vmem:[%s3760_s5 + $0x144] sm:$0xff]  }
  0x38   : >> { %1120 = vrot.lane.b32.xlu0 %v939_v22, %s3555_s6  ;;  %3213 = vmatpush3.bf16.msra.mxu1 %v2954_v43  ;;  %v1320_v62 = vshll.u32 %v3330_v55, 16  ;;  %v1421_v63 = vshrl.u32 %v3327_v25, 16  ;;  %v1418_v26 = vrot.slane %v1416_v54, 1  ;;  %v1428_v17 = vshll.u32 %v3331_v58, 16 }
  0x39   : >> { %3160 = vmatprep.subr.bf16.mxu0 %v2955_v44  ;;  %3206 = vmatprep.subr.bf16.mxu1 %v2955_v44  ;;  %v1414_v19 = vor.u32 %v1413_v57, %v1409_v53  ;;  %v1425_v27 = vrot.slane %v1423_v52, 1  ;;  %v1325_v28 = vshrl.u32 %v3328_v48, 16  ;;  %v2957_v29 = vcombine.low %v3704_v8, %v3709_v9  ;;  %v3338_v22 = vld [vmem:[%s3760_s5 + $0xe0] ss:$0 sps:$4 sm:$0x11]  }
  0x3a   : >> { %v1329_v30 = vrot.slane %v1327_v59, 1  ;;  %v1332_v31 = vshll.u32 %v3332_v24, 16  ;;  %v1318_v32 = vor.u32 %v1317_v61, %v1313_v60  ;;  %v1322_v33 = vrot.slane %v1320_v62, 1  ;;  %v3339_v46 = vld [vmem:[%s3760_s5 + $0x14c] ss:$0 sps:$4 sm:$0x11]  }
  0x3b   : >> { %1138 = vrot.lane.b32.xlu1 %v1047_v45, %s3555_s6  ;;  %3161 = vmatpush3.bf16.msra.mxu0 %v2955_v44  ;;  %v1430_v21 = vrot.slane %v1428_v17, 1  ;;  %v2958_v35 = vcombine.low %v3714_v10, %v3719_v11  ;;  %v1419_v36 = vsel %vm543_vm0, %v1414_v19, %v1418_v26  ;;  %v1426_v20 = vor.u32 %v1425_v27, %v1421_v63  ;;  %v3340_v61 = vld [vmem:[%s3760_s5 + $0xec] ss:$0 sps:$4 sm:$0x11]   ;;  %v3343_v63 = vld [vmem:[%s3760_s5 + $0x18] sm:$0xff]  }
  0x3c   : >> { %1122 = vrot.lane.b32.xlu0 %v951_v50, %s3555_s6  ;;  %3214 = vmatpush3.bf16.msra.mxu1 %v2955_v44  ;;  %v1330_v39 = vor.u32 %v1329_v30, %v1325_v28  ;;  %v1323_v23 = vsel %vm543_vm0, %v1318_v32, %v1322_v33  ;;  %v1699_v43 = vshll.u32 %v3840_v34, 16  ;;  %v1807_v44 = vshll.u32 %v3846_v37, 16  ;;  %v3342_v17 = vld [vmem:[%s3760_s5 + $0x80] ss:$0 sps:$4 sm:$0x11]   ;;  %v3345_v30 = vld [vmem:[%s3760_s5 + $0x84] sm:$0xff]  }
  0x3d   : >> { %3162 = vmatprep.subr.bf16.mxu0 %v2956_v56  ;;  %3207 = vmatprep.subr.bf16.mxu1 %v2956_v56  ;;  %v1800_v45 = vshll.u32 %v3337_v38, 16  ;;  %v2959_v47 = vcombine.low %v3724_v12, %v3729_v13  ;;  %v1711_v49 = vshll.u32 %v3853_v42, 16  ;;  %v1697_v52 = vshrl.u32 %v3840_v34, 16 }
  0x3e   : >> { %v1701_v53 = vrot.slane %v1699_v43, 1  ;;  %v1704_v54 = vshll.u32 %v3338_v22, 16  ;;  %v1805_v55 = vshrl.u32 %v3846_v37, 16  ;;  %v2960_v57 = vcombine.low %v3734_v14, %v3739_v15 }
  0x3f   : >> { %1248 = vrot.lane.b32.xlu1 %v3325_v18, %s3556_s8  ;;  %3163 = vmatpush3.bf16.msra.mxu0 %v2956_v56  ;;  %v3836_v18 = vld [vmem:[%s3760_s5 + $0x138] sm:$0xff]   ;;  %v1802_v58 = vrot.slane %v1800_v45, 1  ;;  %v1809_v59 = vrot.slane %v1807_v44, 1  ;;  %v1812_v60 = vshll.u32 %v3339_v46, 16  ;;  %v1709_v62 = vshrl.u32 %v3853_v42, 16 }
  0x40   : >> { %1232 = vrot.lane.b32.xlu0 %v3326_v40, %s3556_s8  ;;  %3215 = vmatpush3.bf16.msra.mxu1 %v2956_v56  ;;  %v1334_v40 = vrot.slane %v1332_v31, 1  ;;  %v1795_v41 = vshll.u32 %v3836_v18, 16  ;;  %v1793_v50 = vshrl.u32 %v3836_v18, 16  ;;  %v3341_v56 = vld [vmem:[%s3760_s5 + $0x78] sm:$0xff]   ;;  %v1706_v24 = vrot.slane %v1704_v54, 1 }
  0x41   : >> { %3164 = vmatprep.subr.bf16.mxu0 %v2957_v29  ;;  %3208 = vmatprep.subr.bf16.mxu1 %v2957_v29  ;;  %v1713_v26 = vrot.slane %v1711_v49, 1  ;;  %v667_v19 = vshll.u32 %v3341_v56, 16  ;;  %v665_v28 = vshrl.u32 %v3341_v56, 16  ;;  %v1716_v31 = vshll.u32 %v3340_v61, 16  ;;  %v3349_v56 = vld [vmem:[%s3760_s5 + $0x84] sm:$0xff]  }
  0x42   : >> { %v1797_v51 = vrot.slane %v1795_v41, 1  ;;  %v571_v32 = vshll.u32 %v3343_v63, 16  ;;  %v1702_v33 = vor.u32 %v1701_v53, %v1697_v52  ;;  %v677_v46 = vshrl.u32 %v3345_v30, 16 }
  0x43   : >> { %1250 = vrot.lane.b32.xlu1 %v3327_v25, %s3556_s8  ;;  %3165 = vmatpush3.bf16.msra.mxu0 %v2957_v29  ;;  %v1431_v25 = vsel %vm543_vm0, %v1426_v20, %v1430_v21  ;;  %v569_v21 = vshrl.u32 %v3343_v63, 16  ;;  %v1810_v20 = vor.u32 %v1809_v59, %v1805_v55  ;;  %v669_v38 = vrot.slane %v667_v19, 1 }
  0x44   : >> { %1234 = vrot.lane.b32.xlu0 %v3328_v48, %s3556_s8  ;;  %3216 = vmatpush3.bf16.msra.mxu1 %v2957_v29  ;;  %v1335_v48 = vsel %vm543_vm0, %v1330_v39, %v1334_v40  ;;  %v1798_v27 = vor.u32 %v1797_v51, %v1793_v50  ;;  %v3344_v29 = vld [vmem:[%s3760_s5 + $0x20] ss:$0 sps:$4 sm:$0x11]   ;;  %v672_v39 = vshll.u32 %v3342_v17, 16  ;;  %v1714_v41 = vor.u32 %v1713_v26, %v1709_v62  ;;  %v3351_v17 = vld [vmem:[%s3760_s5 + $0x90] sm:$0xff]  }
  0x45   : >> { %3166 = vmatprep.subr.bf16.mxu0 %v2958_v35  ;;  %3209 = vmatprep.subr.bf16.mxu1 %v2958_v35  ;;  %v1718_v43 = vrot.slane %v1716_v31, 1  ;;  %v573_v22 = vrot.slane %v571_v32, 1  ;;  %v576_v44 = vshll.u32 %v3344_v29, 16  ;;  %v1051_v26 = vshll.u32 %v3349_v56, 16 }
  0x46   : >> { %v1803_v40 = vsel %vm543_vm0, %v1798_v27, %v1802_v58  ;;  %v1063_v31 = vshll.u32 %v3351_v17, 16  ;;  %v1049_v32 = vshrl.u32 %v3349_v56, 16 }
  0x47   : >> { %1520 = vrot.lane.b32.xlu1 %v1419_v36, %s3557_s10  ;;  %3167 = vmatpush3.bf16.msra.mxu0 %v2958_v35  ;;  %v3347_v36 = vld [vmem:[%s3760_s5 + $0x24] sm:$0xff]   ;;  %v574_v51 = vor.u32 %v573_v22, %v569_v21  ;;  %v578_v52 = vrot.slane %v576_v44, 1  ;;  %v3355_v21 = vld [vmem:[%s3760_s5 + $0x98] ss:$0 sps:$4 sm:$0x11]  }
  0x48   : >> { %1504 = vrot.lane.b32.xlu0 %v1323_v23, %s3557_s10  ;;  %3217 = vmatpush3.bf16.msra.mxu1 %v2958_v35  ;;  %v3346_v35 = vld [vmem:[%s3760_s5 + $0x8c] ss:$0 sps:$4 sm:$0x11]   ;;  %v679_v23 = vshll.u32 %v3345_v30, 16  ;;  %v583_v45 = vshll.u32 %v3347_v36, 16  ;;  %v581_v53 = vshrl.u32 %v3347_v36, 16 }
  0x49   : >> { %3168 = vmatprep.subr.bf16.mxu0 %v2959_v47  ;;  %3210 = vmatprep.subr.bf16.mxu1 %v2959_v47  ;;  %v684_v50 = vshll.u32 %v3346_v35, 16  ;;  %v579_v61 = vsel %vm543_vm0, %v574_v51, %v578_v52  ;;  %v3354_v30 = vld [vmem:[%s3760_s5 + $0x2c] ss:$0 sps:$4 sm:$0x11]  }
  0x4a   : >> { %v681_v49 = vrot.slane %v679_v23, 1  ;;  %v585_v54 = vrot.slane %v583_v45, 1 }
  0x4b   : >> { %1522 = vrot.lane.b32.xlu1 %v1431_v25, %s3557_s10  ;;  %3169 = vmatpush3.bf16.msra.mxu0 %v2959_v47  ;;  %v1707_v25 = vsel %vm543_vm0, %v1702_v33, %v1706_v24  ;;  %v686_v59 = vrot.slane %v684_v50, 1  ;;  %v3353_v24 = vld [vmem:[%s3760_s5 + $0x8c] ss:$0 sps:$4 sm:$0x11]   ;;  %v1053_v33 = vrot.slane %v1051_v26, 1  ;;  %v3358_v50 = vld [vmem:[%s3760_s5 + $0xe4] sm:$0xff]  }
  0x4c   : >> { %1506 = vrot.lane.b32.xlu0 %v1335_v48, %s3557_s10  ;;  %3218 = vmatpush3.bf16.msra.mxu1 %v2959_v47  ;;  %v670_v47 = vor.u32 %v669_v38, %v665_v28  ;;  %v674_v48 = vrot.slane %v672_v39, 1  ;;  %v682_v58 = vor.u32 %v681_v49, %v677_v46  ;;  %v586_v62 = vor.u32 %v585_v54, %v581_v53  ;;  %v3352_v28 = vld [vmem:[%s3760_s5 + $0x30] sm:$0xff]   ;;  %v3356_v39 = vld [vmem:[%s3760_s5 + $0x38] ss:$0 sps:$4 sm:$0x11]   ;;  %v3357_v46 = vld [vmem:[%s3760_s5 + $0x144] sm:$0xff]  }
  0x4d   : >> { %3170 = vmatprep.subr.bf16.mxu0 %v2960_v57  ;;  %3211 = vmatprep.subr.bf16.mxu1 %v2960_v57  ;;  %v967_v35 = vshll.u32 %v3352_v28, 16  ;;  %v960_v38 = vshll.u32 %v3354_v30, 16  ;;  %v965_v44 = vshrl.u32 %v3352_v28, 16  ;;  %v1435_v53 = vshll.u32 %v3357_v46, 16  ;;  %v3359_v54 = vld [vmem:[%s3760_s5 + $0x150] sm:$0xff]  }
  0x4e   : >> { %v687_v19 = vsel %vm543_vm0, %v682_v58, %v686_v59  ;;  %v1339_v58 = vshll.u32 %v3358_v50, 16  ;;  %v1445_v30 = vshrl.u32 %v3359_v54, 16 }
  0x4f   : >> { %1632 = vrot.lane.b32.xlu1 %v3836_v18, %s3558_s21  ;;  %3171 = vmatpush3.bf16.msra.mxu0 %v2960_v57  ;;  %v1814_v18 = vrot.slane %v1812_v60, 1  ;;  %v3350_v60 = vld [vmem:[%s3760_s5 + $0x24] sm:$0xff]   ;;  %v969_v45 = vrot.slane %v967_v35, 1  ;;  %v3365_v35 = vld [vmem:[%s3760_s5 + $0x150] sm:$0xff]  }
  0x50   : >> { %1616 = vrot.lane.b32.xlu0 %v3840_v34, %s3558_s21  ;;  %3219 = vmatpush3.bf16.msra.mxu1 %v2960_v57  ;;  %v3348_v34 = vld [vmem:[%s3760_s5 + $0x2c] ss:$0 sps:$4 sm:$0x11]   ;;  %v675_v57 = vsel %vm543_vm0, %v670_v47, %v674_v48  ;;  %v955_v27 = vshll.u32 %v3350_v60, 16  ;;  %v953_v36 = vshrl.u32 %v3350_v60, 16 }
  0x51   : >> { %v588_v55 = vshll.u32 %v3348_v34, 16  ;;  %v1061_v34 = vshrl.u32 %v3351_v17, 16  ;;  %v970_v51 = vor.u32 %v969_v45, %v965_v44 }
  0x53   : >> { %1634 = vrot.lane.b32.xlu1 %v3846_v37, %s3558_s21  ;;  %v1815_v37 = vsel %vm543_vm0, %v1810_v20, %v1814_v18  ;;  %v590_v63 = vrot.slane %v588_v55, 1  ;;  %v1056_v18 = vshll.u32 %v3353_v24, 16  ;;  %v957_v20 = vrot.slane %v955_v27, 1  ;;  %v3364_v27 = vld [vmem:[%s3760_s5 + $0xf8] ss:$0 sps:$4 sm:$0x11]  }
  0x54   : >> { %1618 = vrot.lane.b32.xlu0 %v3853_v42, %s3558_s21  ;;  %v1719_v42 = vsel %vm543_vm0, %v1714_v41, %v1718_v43  ;;  %v1065_v41 = vrot.slane %v1063_v31, 1  ;;  %v1068_v43 = vshll.u32 %v3355_v21, 16  ;;  %v1337_v24 = vshrl.u32 %v3358_v50, 16 }
  0x55   : >> { %v591_v29 = vsel %vm543_vm0, %v586_v62, %v590_v63  ;;  %v1058_v23 = vrot.slane %v1056_v18, 1  ;;  %v958_v22 = vor.u32 %v957_v20, %v953_v36  ;;  %v1433_v62 = vshrl.u32 %v3357_v46, 16 }
  0x56   : >> { %v1066_v48 = vor.u32 %v1065_v41, %v1061_v34  ;;  %v1070_v49 = vrot.slane %v1068_v43, 1  ;;  %v1437_v63 = vrot.slane %v1435_v53, 1  ;;  %v1819_v43 = vshll.u32 %v3365_v35, 16 }
  0x57   : >> { %1904 = vrot.lane.b32.xlu1 %v1803_v40, %s3559_s24  ;;  %v1054_v40 = vor.u32 %v1053_v33, %v1049_v32 }
  0x58   : >> { %1888 = vrot.lane.b32.xlu0 %v1707_v25, %s3559_s24  ;;  %v962_v25 = vrot.slane %v960_v38, 1  ;;  %v1071_v55 = vsel %vm543_vm0, %v1066_v48, %v1070_v49  ;;  %v1438_v31 = vor.u32 %v1437_v63, %v1433_v62  ;;  %v3369_v48 = vld [vmem:[%s3760_s5 + $0x158] ss:$0 sps:$4 sm:$0x11]   ;;  %v1821_v53 = vrot.slane %v1819_v43, 1  ;;  %v3375_v62 = vld [vmem:[%s3760_s5 + $0x30] sm:$0xff]  }
  0x59   : >> { %v1059_v47 = vsel %vm543_vm0, %v1054_v40, %v1058_v23  ;;  %v3366_v40 = vld [vmem:[%s3760_s5 + $0xf0] sm:$0xff]  }
  0x5b   : >> { %1906 = vrot.lane.b32.xlu1 %v1815_v37, %s3559_s24  ;;  %v972_v37 = vshll.u32 %v3356_v39, 16  ;;  %v1356_v39 = vshll.u32 %v3364_v27, 16 }
  0x5c   : >> { %1890 = vrot.lane.b32.xlu0 %v1719_v42, %s3559_s24  ;;  %v963_v42 = vsel %vm543_vm0, %v958_v22, %v962_v25  ;;  %v3367_v22 = vld [vmem:[%s3760_s5 + $0x15c] sm:$0xff]  }
  0x5d   : >> { %v974_v52 = vrot.slane %v972_v37, 1  ;;  %v1358_v45 = vrot.slane %v1356_v39, 1  ;;  %v3368_v37 = vld [vmem:[%s3760_s5 + $0xfc] sm:$0xff]   ;;  %v1831_v49 = vshll.u32 %v3367_v22, 16 }
  0x5f   : >> { %756 = vrot.lane.b32.xlu1 %v675_v57, %s3554_s28  ;;  %v3362_v57 = vld [vmem:[%s3760_s5 + $0xec] ss:$0 sps:$4 sm:$0x11]   ;;  %v975_v59 = vsel %vm543_vm0, %v970_v51, %v974_v52  ;;  %v1735_v51 = vshll.u32 %v3368_v37, 16  ;;  %v1817_v52 = vshrl.u32 %v3365_v35, 16  ;;  %v1833_v63 = vrot.slane %v1831_v49, 1 }
  0x60   : >> { %740 = vrot.lane.b32.xlu0 %v579_v61, %s3554_s28  ;;  %v1447_v61 = vshll.u32 %v3359_v54, 16 }
  0x61   : >> { %v1822_v27 = vor.u32 %v1821_v53, %v1817_v52 }
  0x62   : >> { %v1449_v33 = vrot.slane %v1447_v61, 1 }
  0x63   : >> { %758 = vrot.lane.b32.xlu1 %v687_v19, %s3554_s28  ;;  %v1341_v19 = vrot.slane %v1339_v58, 1  ;;  %v1829_v58 = vshrl.u32 %v3367_v22, 16 }
  0x64   : >> { %742 = vrot.lane.b32.xlu0 %v591_v29, %s3554_s28  ;;  %v1344_v29 = vshll.u32 %v3362_v57, 16  ;;  %v1450_v34 = vor.u32 %v1449_v33, %v1445_v30  ;;  %v3371_v57 = vld [vmem:[%s3760_s5 + $0x164] ss:$0 sps:$4 sm:$0x11]  }
  0x65   : >> { %v1342_v21 = vor.u32 %v1341_v19, %v1337_v24  ;;  %v3374_v24 = vld [vmem:[%s3760_s5 + $0x98] ss:$0 sps:$4 sm:$0x11]  }
  0x66   : >> { %v1346_v36 = vrot.slane %v1344_v29, 1  ;;  %v3376_v19 = vld [vmem:[%s3760_s5 + $0x38] ss:$0 sps:$4 sm:$0x11]   ;;  %v3377_v29 = vld [vmem:[%s3760_s5 + $0x9c] sm:$0xff]  }
  0x67   : >> { %868 = vrot.lane.b32.xlu1 %v3349_v56, %s3553_s27  ;;  %v3361_v56 = vld [vmem:[%s3760_s5 + $0x14c] ss:$0 sps:$4 sm:$0x11]   ;;  %v703_v43 = vshll.u32 %v3377_v29, 16 }
  0x68   : >> { %852 = vrot.lane.b32.xlu0 %v3350_v60, %s3553_s27  ;;  %v3360_v60 = vld [vmem:[%s3760_s5 + $0xf0] sm:$0xff]   ;;  %v1440_v26 = vshll.u32 %v3361_v56, 16  ;;  %v1347_v25 = vsel %vm543_vm0, %v1342_v21, %v1346_v36  ;;  %v1733_v21 = vshrl.u32 %v3368_v37, 16  ;;  %v1737_v36 = vrot.slane %v1735_v51, 1 }
  0x69   : >> { %v1349_v20 = vshrl.u32 %v3360_v60, 16  ;;  %v701_v51 = vshrl.u32 %v3377_v29, 16  ;;  %v705_v52 = vrot.slane %v703_v43, 1 }
  0x6a   : >> { %v1442_v32 = vrot.slane %v1440_v26, 1  ;;  %v1836_v26 = vshll.u32 %v3371_v57, 16 }
  0x6b   : >> { %870 = vrot.lane.b32.xlu1 %v3351_v17, %s3553_s27  ;;  %v3363_v17 = vld [vmem:[%s3760_s5 + $0x158] ss:$0 sps:$4 sm:$0x11]  }
  0x6c   : >> { %854 = vrot.lane.b32.xlu0 %v3352_v28, %s3553_s27  ;;  %v1351_v28 = vshll.u32 %v3360_v60, 16  ;;  %v1452_v18 = vshll.u32 %v3363_v17, 16  ;;  %v1443_v23 = vsel %vm543_vm0, %v1438_v31, %v1442_v32  ;;  %v595_v32 = vshll.u32 %v3375_v62, 16 }
  0x6e   : >> { %v1353_v38 = vrot.slane %v1351_v28, 1  ;;  %v1454_v41 = vrot.slane %v1452_v18, 1  ;;  %v1834_v18 = vor.u32 %v1833_v63, %v1829_v58 }
  0x6f   : >> { %1140 = vrot.lane.b32.xlu1 %v1059_v47, %s3555_s6 }
  0x70   : >> { %1124 = vrot.lane.b32.xlu0 %v963_v42, %s3555_s6  ;;  %v1354_v44 = vor.u32 %v1353_v38, %v1349_v20  ;;  %v1455_v47 = vsel %vm543_vm0, %v1450_v34, %v1454_v41  ;;  %v3379_v20 = vld [vmem:[%s3760_s5 + $0x3c] sm:$0xff]   ;;  %v3378_v41 = vld [vmem:[%s3760_s5 + $0xa4] ss:$0 sps:$4 sm:$0x11]  }
  0x71   : >> { %v607_v49 = vshll.u32 %v3379_v20, 16 }
  0x72   : >> { %v1359_v42 = vsel %vm543_vm0, %v1354_v44, %v1358_v45  ;;  %v597_v44 = vrot.slane %v595_v32, 1  ;;  %v600_v45 = vshll.u32 %v3376_v19, 16  ;;  %v3385_v32 = vld [vmem:[%s3760_s5 + $0xa4] ss:$0 sps:$4 sm:$0x11]  }
  0x73   : >> { %1142 = vrot.lane.b32.xlu1 %v1071_v55, %s3555_s6  ;;  %v1721_v55 = vshrl.u32 %v3366_v40, 16  ;;  %v609_v57 = vrot.slane %v607_v49, 1 }
  0x74   : >> { %1126 = vrot.lane.b32.xlu0 %v975_v59, %s3555_s6  ;;  %v1824_v59 = vshll.u32 %v3369_v48, 16  ;;  %v3380_v48 = vld [vmem:[%s3760_s5 + $0x44] ss:$0 sps:$4 sm:$0x11]   ;;  %v602_v53 = vrot.slane %v600_v45, 1 }
  0x75   : >> { %v612_v58 = vshll.u32 %v3380_v48, 16 }
  0x76   : >> { %v1826_v28 = vrot.slane %v1824_v59, 1  ;;  %v3381_v59 = vld [vmem:[%s3760_s5 + $0x9c] sm:$0xff]  }
  0x77   : >> { %1252 = vrot.lane.b32.xlu1 %v3357_v46, %s3556_s8  ;;  %v1723_v46 = vshll.u32 %v3366_v40, 16  ;;  %v614_v19 = vrot.slane %v612_v58, 1  ;;  %v3390_v58 = vld [vmem:[%s3760_s5 + $0xfc] sm:$0xff]  }
  0x78   : >> { %1236 = vrot.lane.b32.xlu0 %v3358_v50, %s3556_s8  ;;  %v3370_v50 = vld [vmem:[%s3760_s5 + $0xf8] ss:$0 sps:$4 sm:$0x11]   ;;  %v1827_v34 = vsel %vm543_vm0, %v1822_v27, %v1826_v28  ;;  %v3383_v27 = vld [vmem:[%s3760_s5 + $0xa8] sm:$0xff]  }
  0x79   : >> { %v1725_v56 = vrot.slane %v1723_v46, 1  ;;  %v1728_v61 = vshll.u32 %v3370_v50, 16  ;;  %v3384_v28 = vld [vmem:[%s3760_s5 + $0x48] sm:$0xff]   ;;  %v1085_v48 = vshrl.u32 %v3383_v27, 16 }
  0x7b   : >> { %1254 = vrot.lane.b32.xlu1 %v3359_v54, %s3556_s8  ;;  %v3373_v54 = vld [vmem:[%s3760_s5 + $0x90] sm:$0xff]   ;;  %v1726_v30 = vor.u32 %v1725_v56, %v1721_v55  ;;  %v1730_v33 = vrot.slane %v1728_v61, 1  ;;  %v706_v61 = vor.u32 %v705_v52, %v701_v51 }
  0x7c   : >> { %1238 = vrot.lane.b32.xlu0 %v3360_v60, %s3556_s8  ;;  %v3372_v60 = vld [vmem:[%s3760_s5 + $0x104] ss:$0 sps:$4 sm:$0x11]   ;;  %v691_v17 = vshll.u32 %v3373_v54, 16  ;;  %v689_v38 = vshrl.u32 %v3373_v54, 16  ;;  %v605_v54 = vshrl.u32 %v3379_v20, 16 }
  0x7d   : >> { %v1740_v31 = vshll.u32 %v3372_v60, 16  ;;  %v1731_v46 = vsel %vm543_vm0, %v1726_v30, %v1730_v33  ;;  %v1075_v30 = vshll.u32 %v3381_v59, 16  ;;  %v1087_v20 = vshll.u32 %v3383_v27, 16 }
  0x7e   : >> { %v693_v39 = vrot.slane %v691_v17, 1  ;;  %v610_v17 = vor.u32 %v609_v57, %v605_v54  ;;  %v3389_v54 = vld [vmem:[%s3760_s5 + $0x15c] sm:$0xff]  }
  0x7f   : >> { %1524 = vrot.lane.b32.xlu1 %v1443_v23, %s3557_s10  ;;  %v696_v23 = vshll.u32 %v3374_v24, 16  ;;  %v3382_v24 = vld [vmem:[%s3760_s5 + $0x3c] sm:$0xff]   ;;  %v1089_v49 = vrot.slane %v1087_v20, 1 }
  0x80   : >> { %1508 = vrot.lane.b32.xlu0 %v1347_v25, %s3557_s10  ;;  %v593_v25 = vshrl.u32 %v3375_v62, 16  ;;  %v694_v50 = vor.u32 %v693_v39, %v689_v38  ;;  %v979_v33 = vshll.u32 %v3382_v24, 16  ;;  %v1073_v38 = vshrl.u32 %v3381_v59, 16 }
  0x81   : >> { %v1077_v39 = vrot.slane %v1075_v30, 1  ;;  %v977_v43 = vshrl.u32 %v3382_v24, 16  ;;  %v3393_v30 = vld [vmem:[%s3760_s5 + $0x164] ss:$0 sps:$4 sm:$0x11]  }
  0x82   : >> { %v598_v56 = vor.u32 %v597_v44, %v593_v25  ;;  %v981_v25 = vrot.slane %v979_v33, 1  ;;  %v3388_v44 = vld [vmem:[%s3760_s5 + $0x50] ss:$0 sps:$4 sm:$0x11]  }
  0x83   : >> { %1526 = vrot.lane.b32.xlu1 %v1455_v47, %s3557_s10  ;;  %v1738_v47 = vor.u32 %v1737_v36, %v1733_v21  ;;  %v615_v21 = vsel %vm543_vm0, %v610_v17, %v614_v19  ;;  %v1078_v45 = vor.u32 %v1077_v39, %v1073_v38  ;;  %v1459_v17 = vshll.u32 %v3389_v54, 16  ;;  %v3395_v38 = vld [vmem:[%s3760_s5 + $0x170] ss:$0 sps:$4 sm:$0x11]  }
  0x84   : >> { %1510 = vrot.lane.b32.xlu0 %v1359_v42, %s3557_s10  ;;  %v698_v42 = vrot.slane %v696_v23, 1  ;;  %v1080_v23 = vshll.u32 %v3385_v32, 16  ;;  %v982_v51 = vor.u32 %v981_v25, %v977_v43  ;;  %v3394_v32 = vld [vmem:[%s3760_s5 + $0x104] ss:$0 sps:$4 sm:$0x11]   ;;  %v1464_v39 = vshll.u32 %v3393_v30, 16 }
  0x86   : >> { %v699_v60 = vsel %vm543_vm0, %v694_v50, %v698_v42  ;;  %v989_v42 = vshrl.u32 %v3384_v28, 16 }
  0x87   : >> { %1636 = vrot.lane.b32.xlu1 %v3365_v35, %s3558_s21  ;;  %v1838_v35 = vrot.slane %v1836_v26, 1  ;;  %v603_v26 = vsel %vm543_vm0, %v598_v56, %v602_v53  ;;  %v1090_v56 = vor.u32 %v1089_v49, %v1085_v48 }
  0x88   : >> { %1620 = vrot.lane.b32.xlu0 %v3366_v40, %s3558_s21  ;;  %v1742_v40 = vrot.slane %v1740_v31, 1 }
  0x8a   : >> { %v1743_v55 = vsel %vm543_vm0, %v1738_v47, %v1742_v40  ;;  %v1082_v47 = vrot.slane %v1080_v23, 1  ;;  %v3396_v23 = vld [vmem:[%s3760_s5 + $0x110] ss:$0 sps:$4 sm:$0x11]  }
  0x8b   : >> { %1638 = vrot.lane.b32.xlu1 %v3367_v22, %s3558_s21  ;;  %v1839_v22 = vsel %vm543_vm0, %v1834_v18, %v1838_v35  ;;  %v3386_v18 = vld [vmem:[%s3760_s5 + $0x44] ss:$0 sps:$4 sm:$0x11]   ;;  %v991_v35 = vshll.u32 %v3384_v28, 16 }
  0x8c   : >> { %1622 = vrot.lane.b32.xlu0 %v3368_v37, %s3558_s21  ;;  %v708_v37 = vshll.u32 %v3378_v41, 16  ;;  %v984_v40 = vshll.u32 %v3386_v18, 16 }
  0x8d   : >> { %v993_v52 = vrot.slane %v991_v35, 1  ;;  %v1461_v35 = vrot.slane %v1459_v17, 1 }
  0x8e   : >> { %v710_v62 = vrot.slane %v708_v37, 1  ;;  %v986_v50 = vrot.slane %v984_v40, 1  ;;  %v996_v37 = vshll.u32 %v3388_v44, 16  ;;  %v1361_v40 = vshrl.u32 %v3390_v58, 16 }
  0x8f   : >> { %1908 = vrot.lane.b32.xlu1 %v1827_v34, %s3559_s24  ;;  %v3387_v34 = vld [vmem:[%s3760_s5 + $0xb0] ss:$0 sps:$4 sm:$0x11]   ;;  %v1368_v44 = vshll.u32 %v3394_v32, 16 }
  0x90   : >> { %1892 = vrot.lane.b32.xlu0 %v1731_v46, %s3559_s24  ;;  %v711_v31 = vsel %vm543_vm0, %v706_v61, %v710_v62  ;;  %v994_v61 = vor.u32 %v993_v52, %v989_v42  ;;  %v998_v62 = vrot.slane %v996_v37, 1  ;;  %v1380_v52 = vshll.u32 %v3396_v23, 16 }
  0x92   : >> { %v999_v33 = vsel %vm543_vm0, %v994_v61, %v998_v62  ;;  %v4046_v61 = vld [vmem:[%s3760_s5 + $0x174] sm:$0xff]   ;;  %v1382_v32 = vrot.slane %v1380_v52, 1 }
  0x93   : >> { %1910 = vrot.lane.b32.xlu1 %v1839_v22, %s3559_s24  ;;  %v1092_v22 = vshll.u32 %v3387_v34, 16  ;;  %v4050_v62 = vld [vmem:[%s3760_s5 + $0x114] sm:$0xff]  }
  0x94   : >> { %1894 = vrot.lane.b32.xlu0 %v1743_v55, %s3559_s24  ;;  %v1083_v55 = vsel %vm543_vm0, %v1078_v45, %v1082_v47  ;;  %v4034_v45 = vld [vmem:[%s3760_s5 + $0x168] sm:$0xff]  }
  0x95   : >> { %v1094_v57 = vrot.slane %v1092_v22, 1  ;;  %v1476_v22 = vshll.u32 %v3395_v38, 16  ;;  %v3402_v38 = vld [vmem:[%s3760_s5 + $0x110] ss:$0 sps:$4 sm:$0x11]   ;;  %v1841_v23 = vshrl.u32 %v4034_v45, 16 }
  0x96   : >> { %v1752_v52 = vshll.u32 %v3402_v38, 16 }
  0x97   : >> { %760 = vrot.lane.b32.xlu1 %v699_v60, %s3554_s28  ;;  %v987_v60 = vsel %vm543_vm0, %v982_v51, %v986_v50  ;;  %v1095_v19 = vsel %vm543_vm0, %v1090_v56, %v1094_v57  ;;  %v4040_v50 = vld [vmem:[%s3760_s5 + $0x108] sm:$0xff]   ;;  %v1466_v51 = vrot.slane %v1464_v39, 1  ;;  %v1370_v56 = vrot.slane %v1368_v44, 1  ;;  %v3404_v44 = vld [vmem:[%s3760_s5 + $0x11c] ss:$0 sps:$4 sm:$0x11]  }
  0x98   : >> { %v3977_v63 = vpop.permute.xlu1 %864  ;;  %744 = vrot.lane.b32.xlu0 %v603_v26, %s3554_s28  ;;  %v1759_v39 = vshll.u32 %v4050_v62, 16  ;;  %v1754_v0 = vrot.slane %v1752_v52, 1  ;;  %v4106_v52 = vld [vmem:[%s3760_s5 + $0x54] sm:$0xff]  }
  0x99   : >> { %v3984_v29 = vpop.permute.xlu0 %848 }
  0x9b   : >> { %762 = vrot.lane.b32.xlu1 %v711_v31, %s3554_s28  ;;  %v3392_v31 = vld [vmem:[%s3760_s5 + $0x108] sm:$0xff]  }
  0x9c   : >> { %v3991_v36 = vpop.permute.xlu1 %866  ;;  %746 = vrot.lane.b32.xlu0 %v615_v21, %s3554_s28  ;;  %v1457_v21 = vshrl.u32 %v3389_v54, 16  ;;  %v1375_v43 = vshll.u32 %v3392_v31, 16  ;;  %v1373_v57 = vshrl.u32 %v3392_v31, 16 }
  0x9d   : >> { %v3996_v41 = vpop.permute.xlu0 %850 }
  0x9e   : >> { %v1462_v42 = vor.u32 %v1461_v35, %v1457_v21 }
  0x9f   : >> { %872 = vrot.lane.b32.xlu1 %v3381_v59, %s3553_s27 }
  0xa0   : >> { %856 = vrot.lane.b32.xlu0 %v3382_v24, %s3553_s27  ;;  %v3391_v24 = vld [vmem:[%s3760_s5 + $0x168] sm:$0xff]  }
  0xa1   : >> { %v4000_v46 = vpop.permute.xlu1 %738  ;;  %v1471_v18 = vshll.u32 %v3391_v24, 16  ;;  %v1469_v48 = vshrl.u32 %v3391_v24, 16 }
  0xa2   : >> { %v4003_v53 = vpop.permute.xlu0 %736 }
  0xa3   : >> { %874 = vrot.lane.b32.xlu1 %v3383_v27, %s3553_s27  ;;  %v1363_v27 = vshll.u32 %v3390_v58, 16  ;;  %v1473_v49 = vrot.slane %v1471_v18, 1 }
  0xa4   : >> { %858 = vrot.lane.b32.xlu0 %v3384_v28, %s3553_s27 }
  0xa5   : >> { %v4010_v59 = vpop.permute.xlu1 %754  ;;  %v1365_v25 = vrot.slane %v1363_v27, 1  ;;  %v1467_v27 = vsel %vm543_vm0, %v1462_v42, %v1466_v51  ;;  %v1474_v30 = vor.u32 %v1473_v49, %v1469_v48 }
  0xa6   : >> { %v4014_v26 = vpop.permute.xlu0 %752 }
  0xa7   : >> { %1144 = vrot.lane.b32.xlu1 %v1083_v55, %s3555_s6  ;;  %v1366_v55 = vor.u32 %v1365_v25, %v1361_v40  ;;  %v1745_v40 = vshrl.u32 %v4040_v50, 16 }
  0xa8   : >> { %1128 = vrot.lane.b32.xlu0 %v987_v60, %s3555_s6  ;;  %v1377_v60 = vrot.slane %v1375_v43, 1 }
  0xa9   : >> { %v4020_v28 = vpop.permute.xlu1 %1136  ;;  %v1371_v21 = vsel %vm543_vm0, %v1366_v55, %v1370_v56  ;;  %v1853_v55 = vshrl.u32 %v4046_v61, 16 }
  0xaa   : >> { %v4025_v20 = vpop.permute.xlu0 %1120  ;;  %v1378_v35 = vor.u32 %v1377_v60, %v1373_v57 }
  0xab   : >> { %1146 = vrot.lane.b32.xlu1 %v1095_v19, %s3555_s6  ;;  %v1478_v19 = vrot.slane %v1476_v22, 1  ;;  %v4074_v22 = vld [vmem:[%s3760_s5 + $0xa8] sm:$0xff]  }
  0xac   : >> { %1130 = vrot.lane.b32.xlu0 %v999_v33, %s3555_s6  ;;  %v3401_v33 = vld [vmem:[%s3760_s5 + $0x170] ss:$0 sps:$4 sm:$0x11]   ;;  %v1383_v57 = vsel %vm543_vm0, %v1378_v35, %v1382_v32 }
  0xad   : >> { %v4031_v34 = vpop.permute.xlu1 %1138  ;;  %v1479_v48 = vsel %vm543_vm0, %v1474_v30, %v1478_v19  ;;  %v1848_v51 = vshll.u32 %v3401_v33, 16  ;;  %v4085_v19 = vld [vmem:[%s3760_s5 + $0x48] sm:$0xff]   ;;  %v1764_v30 = vshll.u32 %v3404_v44, 16  ;;  %v715_v33 = vshll.u32 %v4074_v22, 16 }
  0xae   : >> { %v4036_v47 = vpop.permute.xlu0 %1122  ;;  %v3406_v35 = vld [vmem:[%s3760_s5 + $0xb0] ss:$0 sps:$4 sm:$0x11]   ;;  %v617_v2 = vshrl.u32 %v4085_v19, 16 }
  0xaf   : >> { %1256 = vrot.lane.b32.xlu1 %v3389_v54, %s3556_s8  ;;  %v1843_v54 = vshll.u32 %v4034_v45, 16  ;;  %v1850_v32 = vrot.slane %v1848_v51, 1  ;;  %v1766_v51 = vrot.slane %v1764_v30, 1  ;;  %v3438_v30 = vld [vmem:[%s3760_s5 + $0xc] sm:$0xff]  }
  0xb0   : >> { %1240 = vrot.lane.b32.xlu0 %v3390_v58, %s3556_s8  ;;  %v1747_v58 = vshll.u32 %v4040_v50, 16 }
  0xb1   : >> { %v4043_v37 = vpop.permute.xlu1 %1248  ;;  %v1845_v43 = vrot.slane %v1843_v54, 1 }
  0xb2   : >> { %v4052_v17 = vpop.permute.xlu0 %1232  ;;  %v1749_v49 = vrot.slane %v1747_v58, 1  ;;  %v1757_v58 = vshrl.u32 %v4050_v62, 16 }
  0xb3   : >> { %1258 = vrot.lane.b32.xlu1 %v3391_v24, %s3556_s8  ;;  %v1855_v24 = vshll.u32 %v4046_v61, 16 }
  0xb4   : >> { %1242 = vrot.lane.b32.xlu0 %v3392_v31, %s3556_s8  ;;  %v3403_v31 = vld [vmem:[%s3760_s5 + $0x17c] ss:$0 sps:$4 sm:$0x11]   ;;  %v1750_v38 = vor.u32 %v1749_v49, %v1745_v40  ;;  %v4101_v40 = vld [vmem:[%s3760_s5 + $0xb4] sm:$0xff]  }
  0xb5   : >> { %v4059_v18 = vpop.permute.xlu1 %1250  ;;  %v1857_v56 = vrot.slane %v1855_v24, 1  ;;  %v1860_v54 = vshll.u32 %v3403_v31, 16  ;;  %v1846_v24 = vor.u32 %v1845_v43, %v1841_v23  ;;  %v713_v23 = vshrl.u32 %v4074_v22, 16 }
  0xb6   : >> { %v4067_v25 = vpop.permute.xlu0 %1234  ;;  %v717_v43 = vrot.slane %v715_v33, 1 }
  0xb7   : >> { %1528 = vrot.lane.b32.xlu1 %v1467_v27, %s3557_s10  ;;  %v1761_v27 = vrot.slane %v1759_v39, 1  ;;  %v1858_v39 = vor.u32 %v1857_v56, %v1853_v55  ;;  %v1862_v44 = vrot.slane %v1860_v54, 1  ;;  %v3437_v55 = vld [vmem:[%s3760_s5 + $0x60] sm:$0xff]   ;;  %v1851_v54 = vsel %vm543_vm0, %v1846_v24, %v1850_v32 }
  0xb8   : >> { %1512 = vrot.lane.b32.xlu0 %v1371_v21, %s3557_s10  ;;  %v1938_v56 = vsel %vm1920_vm1, %v3437_v55, %v4014_v26  ;;  %v3410_v26 = vld [vmem:[%s3760_s5 + $0xbc] ss:$0 sps:$4 sm:$0x11]   ;;  %v3439_v55 = vld [vmem:[%s3760_s5] sm:$0xff]   ;;  %v718_v24 = vor.u32 %v717_v43, %v713_v23 }
  0xb9   : >> { %v4077_v42 = vpop.permute.xlu1 %1520  ;;  %v1762_v1 = vor.u32 %v1761_v27, %v1757_v58  ;;  %v1755_v58 = vsel %vm543_vm0, %v1750_v38, %v1754_v0  ;;  %v1922_v0 = vsel %vm1920_vm1, %v3439_v55, %v4003_v53  ;;  %v3412_v23 = vld [vmem:[%s3760_s5 + $0x5c] ss:$0 sps:$4 sm:$0x11]  }
  0xba   : >> { %v4081_v60 = vpop.permute.xlu0 %1504 }
  0xbb   : >> { %1530 = vrot.lane.b32.xlu1 %v1479_v48, %s3557_s10  ;;  %v3408_v48 = vld [vmem:[%s3760_s5 + $0x50] ss:$0 sps:$4 sm:$0x11]   ;;  %v1767_v32 = vsel %vm543_vm0, %v1762_v1, %v1766_v51 }
  0xbc   : >> { %1514 = vrot.lane.b32.xlu0 %v1383_v57, %s3557_s10  ;;  %v619_v57 = vshll.u32 %v4085_v19, 16  ;;  %v624_v27 = vshll.u32 %v3408_v48, 16 }
  0xbd   : >> { %v4090_v21 = vpop.permute.xlu1 %1522 }
  0xbe   : >> { %v4094_v31 = vpop.permute.xlu0 %1506  ;;  %v621_v3 = vrot.slane %v619_v57, 1  ;;  %v3440_v57 = vld [vmem:[%s3760_s5 + $0x6c] sm:$0xff]  }
  0xbf   : >> { %1640 = vrot.lane.b32.xlu1 %v4034_v45, %s3558_s21  ;;  %v720_v45 = vshll.u32 %v3406_v35, 16  ;;  %v1863_v35 = vsel %vm543_vm0, %v1858_v39, %v1862_v44  ;;  %v725_v39 = vshrl.u32 %v4101_v40, 16  ;;  %v631_v44 = vshll.u32 %v4106_v52, 16 }
  0xc0   : >> { %1624 = vrot.lane.b32.xlu0 %v4040_v50, %s3558_s21  ;;  %v1924_v50 = vsel %vm1920_vm1, %v3438_v30, %v4000_v46  ;;  %v727_v46 = vshll.u32 %v4101_v40, 16  ;;  %v1940_v53 = vsel %vm1920_vm1, %v3440_v57, %v4010_v59  ;;  %v732_v30 = vshll.u32 %v3410_v26, 16 }
  0xc1   : >> { %v1633_v49 = vpop.permute.xlu1 %1632  ;;  %v722_v48 = vrot.slane %v720_v45, 1  ;;  %v1957_v51 = vsel %vm1953_vm2, %v1924_v50, %v3996_v41  ;;  %v636_v26 = vshll.u32 %v3412_v23, 16 }
  0xc2   : >> { %v1617_v33 = vpop.permute.xlu0 %1616  ;;  %v729_v41 = vrot.slane %v727_v46, 1 }
  0xc3   : >> { %1642 = vrot.lane.b32.xlu1 %v4046_v61, %s3558_s21  ;;  %v1971_v61 = vsel %vm1953_vm2, %v1938_v56, %v3977_v63  ;;  %v626_v63 = vrot.slane %v624_v27, 1  ;;  %v622_v56 = vor.u32 %v621_v3, %v617_v2  ;;  %v629_v27 = vshrl.u32 %v4106_v52, 16 }
  0xc4   : >> { %1626 = vrot.lane.b32.xlu0 %v4050_v62, %s3558_s21  ;;  %v2004_v1 = vsel %vm1986_vm3, %v1971_v61, %v4020_v28  ;;  %v1955_v62 = vsel %vm1953_vm2, %v1922_v0, %v3984_v29  ;;  %v1973_v29 = vsel %vm1953_vm2, %v1940_v53, %v3991_v36  ;;  %v633_v3 = vrot.slane %v631_v44, 1 }
  0xc5   : >> { %v1635_v38 = vpop.permute.xlu1 %1634  ;;  %v2037_v43 = vsel %vm2019_vm4, %v2004_v1, %v4043_v37  ;;  %v1988_v59 = vsel %vm1986_vm3, %v1955_v62, %v4025_v20  ;;  %v2006_v20 = vsel %vm1986_vm3, %v1973_v29, %v4031_v34  ;;  %v3413_v34 = vld [vmem:[%s3760_s5 + $0xb4] sm:$0xff]   ;;  %v638_v44 = vrot.slane %v636_v26, 1  ;;  %v3415_v1 = vld [vmem:[%s3760_s5 + $0xc0] sm:$0xff]  }
  0xc6   : >> { %v1619_v45 = vpop.permute.xlu0 %1618  ;;  %v2070_v28 = vsel %vm2052_vm5, %v2037_v43, %v4077_v42  ;;  %v2021_v37 = vsel %vm2019_vm4, %v1988_v59, %v4052_v17  ;;  %v2039_v36 = vsel %vm2019_vm4, %v2006_v20, %v4059_v18  ;;  %v730_v18 = vor.u32 %v729_v41, %v725_v39  ;;  %v3416_v62 = vld [vmem:[%s3760_s5 + $0x60] sm:$0xff]   ;;  %v3418_v43 = vld [vmem:[%s3760_s5 + $0x5c] ss:$0 sps:$4 sm:$0x11]  }
  0xc7   : >> { %1912 = vrot.lane.b32.xlu1 %v1851_v54, %s3559_s24  ;;  %v2103_v54 = vsel %vm2085_vm6, %v2070_v28, %v1633_v49  ;;  %v2054_v42 = vsel %vm2052_vm5, %v2021_v37, %v4081_v60  ;;  %v723_v49 = vsel %vm543_vm0, %v718_v24, %v722_v48  ;;  %v1990_v60 = vsel %vm1986_vm3, %v1957_v51, %v4036_v47  ;;  %v3414_v47 = vld [vmem:[%s3760_s5 + $0x54] sm:$0xff]   ;;  %v3419_v41 = vld [vmem:[%s3760_s5 + $0xc8] ss:$0 sps:$4 sm:$0x11]  }
  0xc8   : >> { %1896 = vrot.lane.b32.xlu0 %v1755_v58, %s3559_s24  ;;  %v2087_v17 = vsel %vm2085_vm6, %v2054_v42, %v1617_v33  ;;  %v734_v58 = vrot.slane %v732_v30, 1  ;;  %v2072_v0 = vsel %vm2052_vm5, %v2039_v36, %v4090_v21  ;;  %v2023_v33 = vsel %vm2019_vm4, %v1990_v60, %v4067_v25 }
  0xc9   : >> { %v1905_v2 = vpop.permute.xlu1 %1904  ;;  %v2105_v61 = vsel %vm2085_vm6, %v2072_v0, %v1635_v38  ;;  %v627_v24 = vsel %vm543_vm0, %v622_v56, %v626_v63  ;;  %v2056_v21 = vsel %vm2052_vm5, %v2023_v33, %v4094_v31  ;;  %v634_v39 = vor.u32 %v633_v3, %v629_v27  ;;  %v3417_v31 = vld [vmem:[%s3760_s5 + $0xbc] ss:$0 sps:$4 sm:$0x11]   ;;  %v3420_v3 = vld [vmem:[%s3760_s5 + $0x68] ss:$0 sps:$4 sm:$0x11]  }
  0xca   : >> { %v2144_v50 = vsel %vm2118_vm7, %v2103_v54, %v1905_v2  ;;  %v1889_v55 = vpop.permute.xlu0 %1888  ;;  %v2089_v25 = vsel %vm2085_vm6, %v2056_v21, %v1619_v45  ;;  %v735_v53 = vsel %vm543_vm0, %v730_v18, %v734_v58  ;;  %v1003_v63 = vshll.u32 %v3414_v47, 16 }
  0xcb   : >> { %1914 = vrot.lane.b32.xlu1 %v1863_v35, %s3559_s24  ;;  %3188 = vmatprep.mubr.bf16.mxu1 %v2144_v50  ;;  %v2120_v46 = vsel %vm2118_vm7, %v2087_v17, %v1889_v55  ;;  %v639_v23 = vsel %vm543_vm0, %v634_v39, %v638_v44  ;;  %v1097_v56 = vshrl.u32 %v3413_v34, 16  ;;  %v1111_v59 = vshll.u32 %v3415_v1, 16 }
  0xcc   : >> { %1898 = vrot.lane.b32.xlu0 %v1767_v32, %s3559_s24  ;;  %3172 = vmatprep.mubr.bf16.mxu0 %v2120_v46  ;;  %v1099_v32 = vshll.u32 %v3413_v34, 16  ;;  %v1104_v28 = vshll.u32 %v3417_v31, 16  ;;  %v1001_v29 = vshrl.u32 %v3414_v47, 16  ;;  %v1005_v37 = vrot.slane %v1003_v63, 1  ;;  %v3424_v63 = vld [vmem:[%s3760_s5 + $0x120] sm:$0xff]  }
  0xcd   : >> { %v1907_v35 = vpop.permute.xlu1 %1906  ;;  %v1015_v54 = vshll.u32 %v3416_v62, 16  ;;  %v1008_v2 = vshll.u32 %v3418_v43, 16  ;;  %v1109_v26 = vshrl.u32 %v3415_v1, 16  ;;  %v1113_v36 = vrot.slane %v1111_v59, 1 }
  0xce   : >> { %v2147_v48 = vsel %vm2118_vm7, %v2105_v61, %v1907_v35  ;;  %v1891_v38 = vpop.permute.xlu0 %1890  ;;  %v1101_v30 = vrot.slane %v1099_v32, 1  ;;  %v1106_v50 = vrot.slane %v1104_v28, 1  ;;  %v1116_v17 = vshll.u32 %v3419_v41, 16  ;;  %v3421_v35 = vld [vmem:[%s3760_s5 + $0x174] sm:$0xff]   ;;  %v3423_v32 = vld [vmem:[%s3760_s5 + $0x180] sm:$0xff]  }
  0xcf   : >> { %764 = vrot.lane.b32.xlu1 %v723_v49, %s3554_s28  ;;  %3189 = vmatmul.mubr.bf16.vlgmr.msra.gmra.mrb[0].mxu1 %v2147_v48  ;;  %v2123_v57 = vsel %vm2118_vm7, %v2089_v25, %v1891_v38  ;;  %v1006_v49 = vor.u32 %v1005_v37, %v1001_v29  ;;  %v1010_v58 = vrot.slane %v1008_v2, 1  ;;  %v1013_v60 = vshrl.u32 %v3416_v62, 16  ;;  %v3427_v59 = vld [vmem:[%s3760_s5 + $0x188] ss:$0 sps:$4 sm:$0x11]  }
  0xd0   : >> { %748 = vrot.lane.b32.xlu0 %v627_v24, %s3554_s28  ;;  %3173 = vmatmul.mubr.bf16.vlgmr.msra.gmra.mrb[0].mxu0 %v2123_v57  ;;  %v1102_v42 = vor.u32 %v1101_v30, %v1097_v56  ;;  %v1017_v0 = vrot.slane %v1015_v54, 1  ;;  %v1020_v46 = vshll.u32 %v3420_v3, 16  ;;  %v1114_v33 = vor.u32 %v1113_v36, %v1109_v26  ;;  %v3425_v57 = vld [vmem:[%s3760_s5 + $0x17c] ss:$0 sps:$4 sm:$0x11]  }
  0xd1   : >> { %v4188_v51 = vpop.permute.xlu1 %756  ;;  %v1118_v61 = vrot.slane %v1116_v17, 1  ;;  %v1011_v21 = vsel %vm543_vm0, %v1006_v49, %v1010_v58  ;;  %v1483_v38 = vshll.u32 %v3421_v35, 16  ;;  %v1481_v43 = vshrl.u32 %v3421_v35, 16  ;;  %v3428_v2 = vld [vmem:[%s3760_s5 + $0x128] ss:$0 sps:$4 sm:$0x11]  }
  0xd2   : >> { %v4193_v45 = vpop.permute.xlu0 %740  ;;  %v1018_v48 = vor.u32 %v1017_v0, %v1013_v60  ;;  %v1022_v39 = vrot.slane %v1020_v46, 1  ;;  %v1488_v30 = vshll.u32 %v3425_v57, 16  ;;  %v1495_v28 = vshll.u32 %v3423_v32, 16 }
  0xd3   : >> { %766 = vrot.lane.b32.xlu1 %v735_v53, %s3554_s28  ;;  %v1119_v25 = vsel %vm543_vm0, %v1114_v33, %v1118_v61  ;;  %v1485_v56 = vrot.slane %v1483_v38, 1  ;;  %v1399_v3 = vshll.u32 %v3424_v63, 16  ;;  %v1500_v49 = vshll.u32 %v3427_v59, 16 }
  0xd4   : >> { %750 = vrot.lane.b32.xlu0 %v639_v23, %s3554_s28  ;;  %v1023_v31 = vsel %vm543_vm0, %v1018_v48, %v1022_v39  ;;  %v3426_v23 = vld [vmem:[%s3760_s5 + $0x11c] ss:$0 sps:$4 sm:$0x11]   ;;  %v1490_v36 = vrot.slane %v1488_v30, 1  ;;  %v1497_v17 = vrot.slane %v1495_v28, 1  ;;  %v1397_v46 = vshrl.u32 %v3424_v63, 16 }
  0xd5   : >> { %v4198_v27 = vpop.permute.xlu1 %758  ;;  %v1392_v54 = vshll.u32 %v3426_v23, 16  ;;  %v1486_v26 = vor.u32 %v1485_v56, %v1481_v43  ;;  %v1404_v33 = vshll.u32 %v3428_v2, 16  ;;  %v1502_v48 = vrot.slane %v1500_v49, 1  ;;  %v3431_v23 = vld [vmem:[%s3760_s5 + $0x18c] sm:$0xff]   ;;  %s2998_s28 = sshll.u32 (%p204_p13), %s3535_s16, 9 }
  0xd6   : >> { %v4201_v20 = vpop.permute.xlu0 %742  ;;  %v3433_v43 = vld [vmem:[%s3760_s5 + $0x188] ss:$0 sps:$4 sm:$0x11]   ;;  %v3432_v30 = vld [vmem:[%s3760_s5 + $0x12c] sm:$0xff]  }
  0xd7   : >> { %876 = vrot.lane.b32.xlu1 %v3413_v34, %s3553_s27  ;;  %v1107_v34 = vsel %vm543_vm0, %v1102_v42, %v1106_v50  ;;  %v1493_v50 = vshrl.u32 %v3423_v32, 16  ;;  %v1394_v0 = vrot.slane %v1392_v54, 1  ;;  %v1406_v57 = vrot.slane %v1404_v33, 1  ;;  %v3434_v28 = vld [vmem:[%s3760_s5 + $0x128] ss:$0 sps:$4 sm:$0x11]  }
  0xd8   : >> { %860 = vrot.lane.b32.xlu0 %v3414_v47, %s3553_s27  ;;  %v3422_v47 = vld [vmem:[%s3760_s5 + $0x114] sm:$0xff]   ;;  %v1783_v49 = vshll.u32 %v3432_v30, 16  ;;  %v1877_v33 = vshrl.u32 %v3431_v23, 16 }
  0xd9   : >> { %v4205_v55 = vpop.permute.xlu1 %868  ;;  %v1385_v29 = vshrl.u32 %v3422_v47, 16 }
  0xda   : >> { %v4207_v18 = vpop.permute.xlu0 %852 }
  0xdb   : >> { %878 = vrot.lane.b32.xlu1 %v3415_v1, %s3553_s27  ;;  %v1387_v1 = vshll.u32 %v3422_v47, 16 }
  0xdc   : >> { %862 = vrot.lane.b32.xlu0 %v3416_v62, %s3553_s27  ;;  %s3036_s27 = sshll.u32 (%p204_p13), %s3531_s15, 8  ;;  %s3560_s15 = smov (%p204_p13), [#allocation2]  }
  0xdd   : >> { %v4213_v24 = vpop.permute.xlu1 %870  ;;  %v1389_v37 = vrot.slane %v1387_v1, 1  ;;  %v3430_v1 = vld [vmem:[%s3760_s5 + $0x120] sm:$0xff]   ;;  %s3453_s16 = sshll.u32 (%p204_p13), %s3560_s15, 4  ;;  %s3454_s16 = int_to_ptr.vmem [resolvable:$false] %s3453_s16 }
  0xde   : >> { %v4217_v44 = vpop.permute.xlu0 %854  ;;  %s3455_s9 = scalar_lea.vmem (%p204_p13), %s3454_s16, 32768 }
  0xdf   : >> { %1148 = vrot.lane.b32.xlu1 %v1107_v34, %s3555_s6  ;;  %v1390_v60 = vor.u32 %v1389_v37, %v1385_v29  ;;  %v1401_v34 = vrot.slane %v1399_v3, 1  ;;  %v1771_v29 = vshll.u32 %v3430_v1, 16  ;;  %v1872_v3 = vshll.u32 %v3433_v43, 16 }
  0xe0   : >> { %1132 = vrot.lane.b32.xlu0 %v1011_v21, %s3555_s6  ;;  %v1498_v21 = vor.u32 %v1497_v17, %v1493_v50  ;;  %v3435_v50 = vld [vmem:[%s3760_s5 + $0x194] ss:$0 sps:$4 sm:$0x11]  }
  0xe1   : >> { %v4224_v53 = vpop.permute.xlu1 %1140  ;;  %v1402_v38 = vor.u32 %v1401_v34, %v1397_v46  ;;  %v3436_v17 = vld [vmem:[%s3760_s5 + $0x134] ss:$0 sps:$4 sm:$0x11]   ;;  %v1776_v46 = vshll.u32 %v3434_v28, 16 }
  0xe2   : >> { %v4229_v62 = vpop.permute.xlu0 %1124  ;;  %v1788_v43 = vshll.u32 %v3436_v17, 16 }
  0xe3   : >> { %1150 = vrot.lane.b32.xlu1 %v1119_v25, %s3555_s6  ;;  %v1395_v25 = vsel %vm543_vm0, %v1390_v60, %v1394_v0  ;;  %v1407_v59 = vsel %vm543_vm0, %v1402_v38, %v1406_v57  ;;  %v1769_v60 = vshrl.u32 %v3430_v1, 16  ;;  %v1773_v0 = vrot.slane %v1771_v29, 1  ;;  %v3441_v29 = vld [vmem:[%s3760_s5 + $0x78] sm:$0xff]  }
  0xe4   : >> { %1134 = vrot.lane.b32.xlu0 %v1023_v31, %s3555_s6  ;;  %v1781_v57 = vshrl.u32 %v3432_v30, 16  ;;  %v1790_v17 = vrot.slane %v1788_v43, 1  ;;  %s2562_s6 = sshll.u32 (%p204_p13), %s177_s11, 4  ;;  %s4460_s6 = int_to_ptr.vmem [resolvable:$true] %s2562_s6 }
  0xe5   : >> { %v4234_v41 = vpop.permute.xlu1 %1142  ;;  %p3456_p4 = scmp.lt.s32.totalorder (%p204_p13), %s4460_s6, %s3454_s16 }
  0xe6   : >> { %v4237_v42 = vpop.permute.xlu0 %1126 }
  0xe7   : >> { %1260 = vrot.lane.b32.xlu1 %v3421_v35, %s3556_s8  ;;  %v1491_v35 = vsel %vm543_vm0, %v1486_v26, %v1490_v36  ;;  %v1879_v26 = vshll.u32 %v3431_v23, 16 }
  0xe8   : >> { %1244 = vrot.lane.b32.xlu0 %v3422_v47, %s3556_s8  ;;  %v3429_v47 = vld [vmem:[%s3760_s5 + $0x180] sm:$0xff]  }
  0xe9   : >> { %v4241_v58 = vpop.permute.xlu1 %1252  ;;  %v1867_v56 = vshll.u32 %v3429_v47, 16  ;;  %v1865_v54 = vshrl.u32 %v3429_v47, 16 }
  0xea   : >> { %v4243_v61 = vpop.permute.xlu0 %1236 }
  0xeb   : >> { %1262 = vrot.lane.b32.xlu1 %v3423_v32, %s3556_s8  ;;  %v1503_v32 = vsel %vm543_vm0, %v1498_v21, %v1502_v48  ;;  %v1869_v2 = vrot.slane %v1867_v56, 1  ;;  %v1874_v21 = vrot.slane %v1872_v3, 1  ;;  %v1881_v48 = vrot.slane %v1879_v26, 1 }
  0xec   : >> { %1246 = vrot.lane.b32.xlu0 %v3424_v63, %s3556_s8  ;;  %v1774_v56 = vor.u32 %v1773_v0, %v1769_v60  ;;  %s2559_s8 = sadd.s32 (%p204_p13), %s3036_s27, %s2998_s28 }
  0xed   : >> { %v4249_v39 = vpop.permute.xlu1 %1254 }
  0xee   : >> { %v4253_v31 = vpop.permute.xlu0 %1238 }
  0xef   : >> { %1532 = vrot.lane.b32.xlu1 %v1491_v35, %s3557_s10  ;;  %v1870_v35 = vor.u32 %v1869_v2, %v1865_v54  ;;  %v1882_v2 = vor.u32 %v1881_v48, %v1877_v33 }
  0xf0   : >> { %1516 = vrot.lane.b32.xlu0 %v1395_v25, %s3557_s10  ;;  %v1884_v25 = vshll.u32 %v3435_v50, 16 }
  0xf1   : >> { %v1525_v63 = vpop.permute.xlu1 %1524  ;;  %v1875_v54 = vsel %vm543_vm0, %v1870_v35, %v1874_v21 }
  0xf2   : >> { %v4263_v37 = vpop.permute.xlu0 %1508  ;;  %v1886_v3 = vrot.slane %v1884_v25, 1  ;;  %v3444_v25 = vld [vmem:[%s3760_s5 + $0x24] sm:$0xff]  }
  0xf3   : >> { %1534 = vrot.lane.b32.xlu1 %v1503_v32, %s3557_s10  ;;  %v1785_v32 = vrot.slane %v1783_v49, 1  ;;  %v3442_v49 = vld [vmem:[%s3760_s5 + $0x18] sm:$0xff]  }
  0xf4   : >> { %1518 = vrot.lane.b32.xlu0 %v1407_v59, %s3557_s10  ;;  %v1778_v59 = vrot.slane %v1776_v46, 1  ;;  %v3443_v46 = vld [vmem:[%s3760_s5 + $0x84] sm:$0xff]   ;;  %v1887_v35 = vsel %vm543_vm0, %v1882_v2, %v1886_v3  ;;  %s2999_s10 = sshll.u32 (%p204_p13), %s2559_s8, 6 }
  0xf5   : >> { %v4268_v36 = vpop.permute.xlu1 %1526  ;;  %v1786_v26 = vor.u32 %v1785_v32, %v1781_v57  ;;  %v1944_v33 = vsel %vm1920_vm1, %v3443_v46, %v4198_v27  ;;  %s4465_s20 = scalar_lea.hbm (%p204_p13), %s4524_s3, %s2999_s10 }
  0xf6   : >> { %v4271_v34 = vpop.permute.xlu0 %1510  ;;  %v1779_v60 = vsel %vm543_vm0, %v1774_v56, %v1778_v59 }
  0xf7   : >> { %1644 = vrot.lane.b32.xlu1 %v3429_v47, %s3558_s21  ;;  %v1942_v47 = vsel %vm1920_vm1, %v3441_v29, %v4188_v51  ;;  %v1791_v27 = vsel %vm543_vm0, %v1786_v26, %v1790_v17 }
  0xf8   : >> { %1628 = vrot.lane.b32.xlu0 %v3430_v1, %s3558_s21  ;;  %v1975_v1 = vsel %vm1953_vm2, %v1942_v47, %v4205_v55 }
  0xf9   : >> { %v1637_v38 = vpop.permute.xlu1 %1636  ;;  %v2008_v51 = vsel %vm1986_vm3, %v1975_v1, %v4224_v53 }
  0xfa   : >> { %v1621_v28 = vpop.permute.xlu0 %1620  ;;  %v2041_v55 = vsel %vm2019_vm4, %v2008_v51, %v4241_v58 }
  0xfb   : >> { %1646 = vrot.lane.b32.xlu1 %v3431_v23, %s3558_s21  ;;  %v1926_v23 = vsel %vm1920_vm1, %v3442_v49, %v4193_v45  ;;  %v2074_v53 = vsel %vm2052_vm5, %v2041_v55, %v1525_v63 }
  0xfc   : >> { %1630 = vrot.lane.b32.xlu0 %v3432_v30, %s3558_s21  ;;  %v1959_v0 = vsel %vm1953_vm2, %v1926_v23, %v4207_v18  ;;  %v1977_v18 = vsel %vm1953_vm2, %v1944_v33, %v4213_v24  ;;  %v2107_v21 = vsel %vm2085_vm6, %v2074_v53, %v1637_v38 }
  0xfd   : >> { %v1639_v50 = vpop.permute.xlu1 %1638  ;;  %v1992_v45 = vsel %vm1986_vm3, %v1959_v0, %v4229_v62  ;;  %v1928_v62 = vsel %vm1920_vm1, %v3444_v25, %v4201_v20  ;;  %v2010_v63 = vsel %vm1986_vm3, %v1977_v18, %v4234_v41  ;;  %v3445_v18 = vld [vmem:[%s3760_s5 + $0x90] sm:$0xff]  }
  0xfe   : >> { %v1623_v30 = vpop.permute.xlu0 %1622  ;;  %v2025_v58 = vsel %vm2019_vm4, %v1992_v45, %v4243_v61  ;;  %v1961_v61 = vsel %vm1953_vm2, %v1928_v62, %v4217_v44  ;;  %v2043_v38 = vsel %vm2019_vm4, %v2010_v63, %v4249_v39 }
  0xff   : >> { %1916 = vrot.lane.b32.xlu1 %v1875_v54, %s3559_s24  ;;  %v2058_v24 = vsel %vm2052_vm5, %v2025_v58, %v4263_v37  ;;  %v1994_v20 = vsel %vm1986_vm3, %v1961_v61, %v4237_v42  ;;  %v2076_v41 = vsel %vm2052_vm5, %v2043_v38, %v4268_v36  ;;  %v3447_v61 = vld [vmem:[%s3760_s5 + $0x9c] sm:$0xff]  }
 0x100   : >> { %1900 = vrot.lane.b32.xlu0 %v1779_v60, %s3559_s24  ;;  %v2091_v32 = vsel %vm2085_vm6, %v2058_v24, %v1621_v28  ;;  %v2027_v44 = vsel %vm2019_vm4, %v1994_v20, %v4253_v31  ;;  %v2109_v56 = vsel %vm2085_vm6, %v2076_v41, %v1639_v50 }
 0x101   : >> { %v1909_v48 = vpop.permute.xlu1 %1908  ;;  %v2060_v59 = vsel %vm2052_vm5, %v2027_v44, %v4271_v34 }
 0x102   : >> { %v2150_v57 = vsel %vm2118_vm7, %v2107_v21, %v1909_v48  ;;  %v1893_v43 = vpop.permute.xlu0 %1892  ;;  %v2093_v42 = vsel %vm2085_vm6, %v2060_v59, %v1623_v30 }
 0x103   : >> { %1918 = vrot.lane.b32.xlu1 %v1887_v35, %s3559_s24  ;;  %3192 = vmatprep.mubr.bf16.mxu1 %v2150_v57  ;;  %v2126_v37 = vsel %vm2118_vm7, %v2091_v32, %v1893_v43 }
 0x104   : >> { %1902 = vrot.lane.b32.xlu0 %v1791_v27, %s3559_s24  ;;  %3176 = vmatprep.mubr.bf16.mxu0 %v2126_v37  ;;  %v3446_v27 = vld [vmem:[%s3760_s5 + $0x30] sm:$0xff]  }
 0x105   : >> { %v1911_v39 = vpop.permute.xlu1 %1910 }
 0x106   : >> { %v2153_v28 = vsel %vm2118_vm7, %v2109_v56, %v1911_v39  ;;  %v1895_v29 = vpop.permute.xlu0 %1894  ;;  %v3448_v56 = vld [vmem:[%s3760_s5 + $0x3c] sm:$0xff]   ;;  %s4406_s5 = scalar_lea.vmem %s177_s11, %s3035_s29 [#allocation2]  ;;  %s3449_s29 = scalar_lea.vmem (%p204_p13), %s4460_s6, 16384 }
 0x107   : >> { %3193 = vmatmul.mubr.bf16.gmra.mrb[4].mxu1 %v2153_v28  ;;  %v2129_v36 = vsel %vm2118_vm7, %v2093_v42, %v1895_v29  ;;  %p3450_p0 = scmp.ne.s32.totalorder (%p204_p13), %s4460_s6, %s3449_s29  ;;  %p3457_p5 = scmp.lt.s32.totalorder (%p204_p13), %s3455_s9, %s3449_s29 }
 0x108   : >> { %3177 = vmatmul.mubr.bf16.gmra.mrb[4].mxu0 %v2129_v36 }
 0x109   : >> { %v761_v47 = vpop.permute.xlu1 %760  ;;  %p3451_p1 = pnand (%p204_p13), %p3450_p0, %p3634_p3  ;;  %p3458_p6 = por (%p204_p13), %p3457_p5, %p3456_p4 }
 0x10a   : >> { %v745_v31 = vpop.permute.xlu0 %744  ;;  %v1946_v58 = vsel %vm1920_vm1, %v3445_v18, %v761_v47 }
 0x10b   : >> { %v1930_v25 = vsel %vm1920_vm1, %v3446_v27, %v745_v31  ;;  %p3452_p2 = pneg (%p204_p13), %p3451_p1 }
 0x10d   : >> { %v763_v54 = vpop.permute.xlu1 %762  ;;  %p3459_p7 = pnand (%p204_p13), %p3458_p6, %p3452_p2 }
 0x10e   : >> { %v747_v2 = vpop.permute.xlu0 %746  ;;  %v1948_v38 = vsel %vm1920_vm1, %v3447_v61, %v763_v54 }
 0x10f   : >> { %v1932_v39 = vsel %vm1920_vm1, %v3448_v56, %v747_v2 }
 0x111   : >> { %v873_v3 = vpop.permute.xlu1 %872 }
 0x112   : >> { %v857_v1 = vpop.permute.xlu0 %856  ;;  %v1979_v21 = vsel %vm1953_vm2, %v1946_v58, %v873_v3 }
 0x113   : >> { %v1963_v63 = vsel %vm1953_vm2, %v1930_v25, %v857_v1 }
 0x115   : >> { %v875_v50 = vpop.permute.xlu1 %874 }
 0x116   : >> { %v859_v26 = vpop.permute.xlu0 %858  ;;  %v1981_v20 = vsel %vm1953_vm2, %v1948_v38, %v875_v50 }
 0x117   : >> { %v1965_v29 = vsel %vm1953_vm2, %v1932_v39, %v859_v26 }
 0x119   : >> { %v1145_v17 = vpop.permute.xlu1 %1144 }
 0x11a   : >> { %v1129_v34 = vpop.permute.xlu0 %1128  ;;  %v2012_v62 = vsel %vm1986_vm3, %v1979_v21, %v1145_v17 }
 0x11b   : >> { %v1996_v32 = vsel %vm1986_vm3, %v1963_v63, %v1129_v34 }
 0x11d   : >> { %v1147_v49 = vpop.permute.xlu1 %1146 }
 0x11e   : >> { %v1131_v23 = vpop.permute.xlu0 %1130  ;;  %v2014_v59 = vsel %vm1986_vm3, %v1981_v20, %v1147_v49 }
 0x11f   : >> { %v1998_v54 = vsel %vm1986_vm3, %v1965_v29, %v1131_v23 }
 0x121   : >> { %v1257_v51 = vpop.permute.xlu1 %1256 }
 0x122   : >> { %v1241_v60 = vpop.permute.xlu0 %1240  ;;  %v2045_v24 = vsel %vm2019_vm4, %v2012_v62, %v1257_v51 }
 0x123   : >> { %v2029_v41 = vsel %vm2019_vm4, %v1996_v32, %v1241_v60 }
 0x125   : >> { %v1259_v0 = vpop.permute.xlu1 %1258 }
 0x126   : >> { %v1243_v55 = vpop.permute.xlu0 %1242  ;;  %v2047_v36 = vsel %vm2019_vm4, %v2014_v59, %v1259_v0 }
 0x127   : >> { %v2031_v1 = vsel %vm2019_vm4, %v1998_v54, %v1243_v55 }
 0x129   : >> { %v1529_v30 = vpop.permute.xlu1 %1528 }
 0x12a   : >> { %v1513_v46 = vpop.permute.xlu0 %1512  ;;  %v2078_v43 = vsel %vm2052_vm5, %v2045_v24, %v1529_v30 }
 0x12b   : >> { %v2062_v28 = vsel %vm2052_vm5, %v2029_v41, %v1513_v46 }
 0x12d   : >> { %v1531_v33 = vpop.permute.xlu1 %1530 }
 0x12e   : >> { %v1515_v45 = vpop.permute.xlu0 %1514  ;;  %v2080_v3 = vsel %vm2052_vm5, %v2047_v36, %v1531_v33 }
 0x12f   : >> { %v2064_v26 = vsel %vm2052_vm5, %v2031_v1, %v1515_v45 }
 0x131   : >> { %v1641_v53 = vpop.permute.xlu1 %1640 }
 0x132   : >> { %v1625_v35 = vpop.permute.xlu0 %1624  ;;  %v2111_v37 = vsel %vm2085_vm6, %v2078_v43, %v1641_v53 }
 0x133   : >> { %v2095_v47 = vsel %vm2085_vm6, %v2062_v28, %v1625_v35 }
 0x135   : >> { %v1643_v48 = vpop.permute.xlu1 %1642 }
 0x136   : >> { %v1627_v57 = vpop.permute.xlu0 %1626  ;;  %v2113_v50 = vsel %vm2085_vm6, %v2080_v3, %v1643_v48 }
 0x137   : >> { %v2097_v49 = vsel %vm2085_vm6, %v2064_v26, %v1627_v57 }
 0x139   : >> { %v1913_v44 = vpop.permute.xlu1 %1912 }
 0x13a   : >> { %v2156_v42 = vsel %vm2118_vm7, %v2111_v37, %v1913_v44  ;;  %v1897_v31 = vpop.permute.xlu0 %1896 }
 0x13b   : >> { %3196 = vmatprep.mubr.bf16.mxu1 %v2156_v42  ;;  %v2132_v2 = vsel %vm2118_vm7, %v2095_v47, %v1897_v31 }
 0x13c   : >> { %3180 = vmatprep.mubr.bf16.mxu0 %v2132_v2 }
 0x13d   : >> { %v1915_v17 = vpop.permute.xlu1 %1914 }
 0x13e   : >> { %v2159_v34 = vsel %vm2118_vm7, %v2113_v50, %v1915_v17  ;;  %v1899_v51 = vpop.permute.xlu0 %1898 }
 0x13f   : >> { %3197 = vmatmul.mubr.bf16.gmra.mrb[8].mxu1 %v2159_v34  ;;  %v2135_v23 = vsel %vm2118_vm7, %v2097_v49, %v1899_v51 }
 0x140   : >> { %3181 = vmatmul.mubr.bf16.gmra.mrb[8].mxu0 %v2135_v23 }
 0x141   : >> { %v765_v60 = vpop.permute.xlu1 %764 }
 0x142   : >> { %v749_v0 = vpop.permute.xlu0 %748  ;;  %v1950_v43 = vsel %vm1920_vm1, %v4074_v22, %v765_v60 }
 0x143   : >> { %v1934_v37 = vsel %vm1920_vm1, %v4085_v19, %v749_v0 }
 0x145   : >> { %v767_v30 = vpop.permute.xlu1 %766 }
 0x146   : >> { %v751_v46 = vpop.permute.xlu0 %750  ;;  %v1952_v28 = vsel %vm1920_vm1, %v4101_v40, %v767_v30 }
 0x147   : >> { %v1936_v31 = vsel %vm1920_vm1, %v4106_v52, %v751_v46 }
 0x149   : >> { %v877_v55 = vpop.permute.xlu1 %876 }
 0x14a   : >> { %v861_v33 = vpop.permute.xlu0 %860  ;;  %v1983_v20 = vsel %vm1953_vm2, %v1950_v43, %v877_v55 }
 0x14b   : >> { %v1967_v56 = vsel %vm1953_vm2, %v1934_v37, %v861_v33 }
 0x14d   : >> { %v879_v53 = vpop.permute.xlu1 %878 }
 0x14e   : >> { %v863_v35 = vpop.permute.xlu0 %862  ;;  %v1985_v29 = vsel %vm1953_vm2, %v1952_v28, %v879_v53 }
 0x14f   : >> { %v1969_v2 = vsel %vm1953_vm2, %v1936_v31, %v863_v35 }
 0x151   : >> { %v1149_v18 = vpop.permute.xlu1 %1148 }
 0x152   : >> { %v1133_v58 = vpop.permute.xlu0 %1132  ;;  %v2016_v44 = vsel %vm1986_vm3, %v1983_v20, %v1149_v18 }
 0x153   : >> { %v2000_v42 = vsel %vm1986_vm3, %v1967_v56, %v1133_v58 }
 0x155   : >> { %v1151_v45 = vpop.permute.xlu1 %1150 }
 0x156   : >> { %v1135_v21 = vpop.permute.xlu0 %1134  ;;  %v2018_v54 = vsel %vm1986_vm3, %v1985_v29, %v1151_v45 }
 0x157   : >> { %v2002_v26 = vsel %vm1986_vm3, %v1969_v2, %v1135_v21 }
 0x159   : >> { %v1261_v48 = vpop.permute.xlu1 %1260 }
 0x15a   : >> { %v1245_v27 = vpop.permute.xlu0 %1244  ;;  %v2049_v39 = vsel %vm2019_vm4, %v2016_v44, %v1261_v48 }
 0x15b   : >> { %v2033_v36 = vsel %vm2019_vm4, %v2000_v42, %v1245_v27 }
 0x15d   : >> { %v1263_v25 = vpop.permute.xlu1 %1262 }
 0x15e   : >> { %v1247_v62 = vpop.permute.xlu0 %1246  ;;  %v2051_v1 = vsel %vm2019_vm4, %v2018_v54, %v1263_v25 }
 0x15f   : >> { %v2035_v49 = vsel %vm2019_vm4, %v2002_v26, %v1247_v62 }
 0x161   : >> { %v1533_v63 = vpop.permute.xlu1 %1532 }
 0x162   : >> { %v1517_v24 = vpop.permute.xlu0 %1516  ;;  %v2082_v22 = vsel %vm2052_vm5, %v2049_v39, %v1533_v63 }
 0x163   : >> { %v2066_v3 = vsel %vm2052_vm5, %v2033_v36, %v1517_v24 }
 0x165   : >> { %v1535_v57 = vpop.permute.xlu1 %1534 }
 0x166   : >> { %v1519_v61 = vpop.permute.xlu0 %1518  ;;  %v2084_v34 = vsel %vm2052_vm5, %v2051_v1, %v1535_v57 }
 0x167   : >> { %v2068_v60 = vsel %vm2052_vm5, %v2035_v49, %v1519_v61 }
 0x169   : >> { %v1645_v38 = vpop.permute.xlu1 %1644 }
 0x16a   : >> { %v1629_v32 = vpop.permute.xlu0 %1628  ;;  %v2115_v19 = vsel %vm2085_vm6, %v2082_v22, %v1645_v38 }
 0x16b   : >> { %v2099_v50 = vsel %vm2085_vm6, %v2066_v3, %v1629_v32 }
 0x16d   : >> { %v1647_v41 = vpop.permute.xlu1 %1646 }
 0x16e   : >> { %v1631_v59 = vpop.permute.xlu0 %1630  ;;  %v2117_v51 = vsel %vm2085_vm6, %v2084_v34, %v1647_v41 }
 0x16f   : >> { %v2101_v30 = vsel %vm2085_vm6, %v2068_v60, %v1631_v59 }
 0x171   : >> { %v1917_v47 = vpop.permute.xlu1 %1916 }
 0x172   : >> { %v2162_v40 = vsel %vm2118_vm7, %v2115_v19, %v1917_v47  ;;  %v1901_v17 = vpop.permute.xlu0 %1900 }
 0x173   : >> { %3200 = vmatprep.mubr.bf16.mxu1 %v2162_v40  ;;  %v2138_v52 = vsel %vm2118_vm7, %v2099_v50, %v1901_v17 }
 0x174   : >> { %3184 = vmatprep.mubr.bf16.mxu0 %v2138_v52 }
 0x175   : >> { %v1919_v23 = vpop.permute.xlu1 %1918 }
 0x176   : >> { %v2165_v0 = vsel %vm2118_vm7, %v2117_v51, %v1919_v23  ;;  %v1903_v46 = vpop.permute.xlu0 %1902 }
 0x177   : >> { %3201 = vmatmul.mubr.bf16.gmra.mrb[12].mxu1 %v2165_v0  ;;  %v2141_v55 = vsel %vm2118_vm7, %v2101_v30, %v1903_v46 }
 0x178   : >> { %3185 = vmatmul.mubr.bf16.gmra.mrb[12].mxu0 %v2141_v55 }
 0x1a2   : >> { %v3190_v33 = vpop.f32.mrb[0].mxu1 }
 0x1a3   : >> { %v2319_v53 = vpop.f32.mrb[1].mxu1  ;;  %v3174_v35 = vpop.f32.mrb[0].mxu0  ;;  %v2328_v58 = vadd.f32 %v3190_v33, %v3749_v16 }
 0x1a4   : >> { %v3191_v18 = vpop.f32.mrb[2].mxu1  ;;  %v2255_v45 = vpop.f32.mrb[1].mxu0  ;;  %v2320_v27 = vadd.f32 %v3749_v16, %v2319_v53  ;;  %v2264_v63 = vadd.f32 %v3174_v35, %v3749_v16 }
 0x1a5   : >> { %v2331_v21 = vadd.f32 %v3191_v18, %v3749_v16  ;;  %v2322_v48 = vpop.f32.mrb[3].mxu1  ;;  %v3175_v25 = vpop.f32.mrb[2].mxu0  ;;  %v2256_v38 = vadd.f32 %v3749_v16, %v2255_v45 }
 0x1a6   : >> { %v2323_v62 = vadd.f32 %v3749_v16, %v2322_v48  ;;  %v2267_v24 = vadd.f32 %v3175_v25, %v3749_v16  ;;  %v2258_v61 = vpop.f32.mrb[3].mxu0 }
 0x1a7   : >> { %v3085_v57 = vpack.c.bf16 %v2331_v21, %v2328_v58  ;;  %v2259_v32 = vadd.f32 %v3749_v16, %v2258_v61 }
 0x1a8   : >> { %v3080_v43 = vpack.c.bf16 %v2323_v62, %v2320_v27  ;;  %v3045_v20 = vpack.c.bf16 %v2267_v24, %v2264_v63 }
 0x1a9   : >> { %3125 = vst [vmem:[%s4406_s5 + $0x48] sm:$0xff] %v3085_v57   ;;  %v3040_v41 = vpack.c.bf16 %v2259_v32, %v2256_v38 }
 0x1aa   : >> { %3124 = vst [vmem:[%s4406_s5 + $0x40] sm:$0xff] %v3080_v43   ;;  %3117 = vst [vmem:[%s4406_s5 + $0x8] sm:$0xff] %v3045_v20  }
 0x1ab   : >> { %3041 = vst [vmem:[%s4406_s5] sm:$0xff] %v3040_v41  }
 0x1da   : >> { %v3194_v37 = vpop.f32.mrb[4].mxu1 }
 0x1db   : >> { %v2335_v44 = vpop.f32.mrb[5].mxu1  ;;  %v3178_v56 = vpop.f32.mrb[4].mxu0  ;;  %v2344_v59 = vadd.f32 %v3194_v37, %v3749_v16 }
 0x1dc   : >> { %v3195_v39 = vpop.f32.mrb[6].mxu1  ;;  %v2271_v28 = vpop.f32.mrb[5].mxu0  ;;  %v2336_v29 = vadd.f32 %v3749_v16, %v2335_v44  ;;  %v2280_v47 = vadd.f32 %v3178_v56, %v3749_v16 }
 0x1dd   : >> { %v2347_v42 = vadd.f32 %v3195_v39, %v3749_v16  ;;  %v2338_v22 = vpop.f32.mrb[7].mxu1  ;;  %v3179_v36 = vpop.f32.mrb[6].mxu0  ;;  %v2272_v40 = vadd.f32 %v3749_v16, %v2271_v28 }
 0x1de   : >> { %v2339_v19 = vadd.f32 %v3749_v16, %v2338_v22  ;;  %v2283_v31 = vadd.f32 %v3179_v36, %v3749_v16  ;;  %v2274_v3 = vpop.f32.mrb[7].mxu0 }
 0x1df   : >> { %v3095_v54 = vpack.c.bf16 %v2347_v42, %v2344_v59  ;;  %v2275_v2 = vadd.f32 %v3749_v16, %v2274_v3 }
 0x1e0   : >> { %v3090_v1 = vpack.c.bf16 %v2339_v19, %v2336_v29  ;;  %v3055_v50 = vpack.c.bf16 %v2283_v31, %v2280_v47 }
 0x1e1   : >> { %3127 = vst [vmem:[%s4406_s5 + $0x58] sm:$0xff] %v3095_v54   ;;  %v3050_v17 = vpack.c.bf16 %v2275_v2, %v2272_v40 }
 0x1e2   : >> { %3126 = vst [vmem:[%s4406_s5 + $0x50] sm:$0xff] %v3090_v1   ;;  %3119 = vst [vmem:[%s4406_s5 + $0x18] sm:$0xff] %v3055_v50  }
 0x1e3   : >> { %3118 = vst [vmem:[%s4406_s5 + $0x10] sm:$0xff] %v3050_v17  }
 0x212   : >> { %v3198_v26 = vpop.f32.mrb[8].mxu1 }
 0x213   : >> { %v2351_v34 = vpop.f32.mrb[9].mxu1  ;;  %v3182_v52 = vpop.f32.mrb[8].mxu0  ;;  %v2360_v51 = vadd.f32 %v3198_v26, %v3749_v16 }
 0x214   : >> { %v3199_v49 = vpop.f32.mrb[10].mxu1  ;;  %v2287_v23 = vpop.f32.mrb[9].mxu0  ;;  %v2352_v30 = vadd.f32 %v3749_v16, %v2351_v34  ;;  %v2296_v33 = vadd.f32 %v3182_v52, %v3749_v16 }
 0x215   : >> { %v2363_v60 = vadd.f32 %v3199_v49, %v3749_v16  ;;  %v2354_v0 = vpop.f32.mrb[11].mxu1  ;;  %v3183_v46 = vpop.f32.mrb[10].mxu0  ;;  %v2288_v58 = vadd.f32 %v3749_v16, %v2287_v23 }
 0x216   : >> { %v2355_v55 = vadd.f32 %v3749_v16, %v2354_v0  ;;  %v2299_v53 = vadd.f32 %v3183_v46, %v3749_v16  ;;  %v2290_v18 = vpop.f32.mrb[11].mxu0 }
 0x217   : >> { %v3105_v35 = vpack.c.bf16 %v2363_v60, %v2360_v51  ;;  %v2291_v45 = vadd.f32 %v3749_v16, %v2290_v18 }
 0x218   : >> { %v3100_v21 = vpack.c.bf16 %v2355_v55, %v2352_v30  ;;  %v3065_v48 = vpack.c.bf16 %v2299_v53, %v2296_v33 }
 0x219   : >> { %3129 = vst [vmem:[%s4406_s5 + $0x68] sm:$0xff] %v3105_v35   ;;  %v3060_v27 = vpack.c.bf16 %v2291_v45, %v2288_v58 }
 0x21a   : >> { %3128 = vst [vmem:[%s4406_s5 + $0x60] sm:$0xff] %v3100_v21   ;;  %3121 = vst [vmem:[%s4406_s5 + $0x28] sm:$0xff] %v3065_v48  }
 0x21b   : >> { %3120 = vst [vmem:[%s4406_s5 + $0x20] sm:$0xff] %v3060_v27  }
 0x24a   : >> { %v3202_v25 = vpop.f32.mrb[12].mxu1 }
 0x24b   : >> { %v2367_v62 = vpop.f32.mrb[13].mxu1  ;;  %v3186_v63 = vpop.f32.mrb[12].mxu0  ;;  %v2376_v57 = vadd.f32 %v3202_v25, %v3749_v16 }
 0x24c   : >> { %v3203_v24 = vpop.f32.mrb[14].mxu1  ;;  %v2303_v61 = vpop.f32.mrb[13].mxu0  ;;  %v2368_v43 = vadd.f32 %v3749_v16, %v2367_v62  ;;  %v2312_v37 = vadd.f32 %v3186_v63, %v3749_v16 }
 0x24d   : >> { %v2379_v38 = vadd.f32 %v3203_v24, %v3749_v16  ;;  %v2370_v32 = vpop.f32.mrb[15].mxu1  ;;  %v3187_v20 = vpop.f32.mrb[14].mxu0  ;;  %v2304_v59 = vadd.f32 %v3749_v16, %v2303_v61  ;;  %206 = sbr.rel (!%p204_p13) target bundleno = 32 (0x20), region = 79 }
 0x24e   : >> { %v2371_v41 = vadd.f32 %v3749_v16, %v2370_v32  ;;  %v2315_v44 = vadd.f32 %v3187_v20, %v3749_v16  ;;  %v2306_v39 = vpop.f32.mrb[15].mxu0 }
 0x24f   : >> { %v3115_v56 = vpack.c.bf16 %v2379_v38, %v2376_v57  ;;  %v2307_v28 = vadd.f32 %v3749_v16, %v2306_v39 }
 0x250   : >> { %v3110_v42 = vpack.c.bf16 %v2371_v41, %v2368_v43  ;;  %v3075_v22 = vpack.c.bf16 %v2315_v44, %v2312_v37 }
 0x251   : >> { %3131 = vst [vmem:[%s4406_s5 + $0x78] sm:$0xff] %v3115_v56   ;;  %v3070_v29 = vpack.c.bf16 %v2307_v28, %v2304_v59 }
 0x252   : >> { %3130 = vst [vmem:[%s4406_s5 + $0x70] sm:$0xff] %v3110_v42   ;;  %3123 = vst [vmem:[%s4406_s5 + $0x38] sm:$0xff] %v3075_v22  }
 0x253   : >> { %3122 = vst [vmem:[%s4406_s5 + $0x30] sm:$0xff] %v3070_v29  }
 0x254   : > { %3462 = shalt.err (!%p3459_p7)
}
 0x255   : > { %s3463_s4 = scalar_lea.hbm %s4465_s20, 16384  ;;  %s3467_s27 = scalar_lea.hbm %s4524_s3, 65536 }
 0x256   : > { %p3464_p9 = scmp.ne.s32.totalorder %s4465_s20, %s3463_s4  ;;  %p3468_p12 = scmp.lt.u32.totalorder %s4465_s20, %s4524_s3 }
 0x257   : > { %p3469_p13 = scmp.lt.u32.totalorder %s3467_s27, %s3463_s4  ;;  %p3471_p1 = scmp.lt.u32.totalorder %s3463_s4, %s4465_s20 }
 0x258   : > { %p3465_p10 = pnand %p3464_p9, %p3634_p3 }
 0x259   : > { %p3470_p0 = por %p3469_p13, %p3468_p12 }
 0x25a   : > { %p3466_p11 = pneg %p3465_p10 }
 0x25b   : > { %p3472_p2 = por %p3471_p1, %p3470_p0 }
 0x25d   : > { %p3473_p4 = pnand %p3472_p2, %p3466_p11 }
 0x25f   : > { %3476 = shalt.err (!%p3473_p4)
}
 0x260   : > { %s3561_s10 = smov 64   ;;  %s3562_s21 = smov 4  }
 0x261   : > { %3221 = dma.vmem_to_hbm [thread:$0]  (%p3634_p3), %s4460_s6, 16384, %s4465_s20, %s4469_s7, %s3561_s10, %s3561_s10, %s3562_s21  }
 0x262 PF: > { %p3227_p5 = scmp.ge.s32.totalorder %s3547_s19, 2  ;;  %s2577_s24 = sand.u32 1, %s3519_s12  }
 0x263   : > { %s2578_s29 = scalar_lea.sflag [#allocation3], %s2577_s24 }
 0x264   : > { %p3224_p6 = pnand %p3227_p5, %p3643_p8 }
 0x266   : > { %3514 = dma.done.wait (!%p3224_p6), %s2578_s29, 16384  }
 0x267   : > { %3516 = vsyncadd (!%p3224_p6), %s2578_s29, 4294950912  ;;  %s16_s19 = sadd.s32 1, %s3547_s19   ;;  %s4535_s12 = smov %s3523_s13 }
 0x268   : > { %p13_p7 = scmp.ge.s32.totalorder %s16_s19, 6   ;;  %s4536_s13 = smov %s3527_s14 }
 0x269   : > { %s4537_s14 = smov %s3652_s30  ;;  %s4538_s15 = smov %s3539_s17 }
 0x26a   : > { %s4539_s16 = smov %s3543_s18  ;;  %s4540_s17 = smov %s4543_s22 }
 0x26b   : > { %s4541_s18 = smov %s4547_s23  ;;  %15 = sbr.rel (!%p13_p7) target bundleno = 5 (0x5), region = 90 }
 0x272   :  { %2583 = vsyncpa [#allocation3], 1 }
 0x273   :  { %2585 = vsyncpa [#allocation3 + $0x1], 1 }

</bundles_post_ra>
